<compile_context>
chip_gen: v6e
topology: v6e:2x2x1
jax: 0.10.0
libtpu: 0.0.40
codegen_flags: <defaults>
</compile_context>

<pallas_src>
import functools

import jax
import jax.numpy as jnp
from jax.experimental import pallas as pl
from jax.experimental.pallas import tpu as pltpu


def _sigmoid(v):
    # tanh-form logistic: a single EUP transcendental, no divide on the VALU.
    return 0.5 * (jnp.tanh(0.5 * v) + 1.0)


def _swish(v):
    return v * _sigmoid(v)


def mbconv_kernel(x_ref, w_exp_ref, aux_ref, sew_ref, w_pr_ref, o_ref,
                  *, k, pad, H, W, Nb, Cin, Cexp, Cout, Csq,
                  vpu_expand, apply_skip):
    L = H * W
    kk = k * k

    # ---- expand 1x1 conv (bn0 scale already folded into w_exp) ----
    bias0 = aux_ref[0:Cexp, 0:1]                                   # (Cexp, 1)
    if vpu_expand:
        # Tiny Cin: Cin broadcast-MACs on the VPU instead of an under-filled MXU matmul.
        w_exp = w_exp_ref[...]                                     # (Cexp, Cin) f32
        y = None
        for c in range(Cin):
            xc = x_ref[:, c:c + 1, :].astype(jnp.float32)          # (Nb, 1, L)
            term = w_exp[:, c:c + 1][None, :, :] * xc              # (Nb, Cexp, L)
            y = term if y is None else y + term
    else:
        w_exp = w_exp_ref[...]                                     # (Cexp, Cin) bf16
        ys = [jnp.dot(w_exp, x_ref[n], preferred_element_type=jnp.float32)
              for n in range(Nb)]
        y = jnp.stack(ys, axis=0)                                  # (Nb, Cexp, L)
    y = y + bias0[None, :, :]
    y = _swish(y)

    # ---- depthwise kxk conv, TF SAME, stride 1 (bn1 scale folded into taps) ----
    # Static lane-rolls (XLU) + precomputed border masks, accumulated in registers.
    y2 = y.reshape(Nb * Cexp, L)
    taps = aux_ref[0:Cexp, 1:1 + kk]                               # (Cexp, k*k)
    if Nb > 1:
        taps = jnp.concatenate([taps] * Nb, axis=0)                # (Nb*Cexp, k*k)
    pos = jax.lax.broadcasted_iota(jnp.int32, (1, L), 1)
    if W & (W - 1) == 0:
        col = jnp.bitwise_and(pos, W - 1)                          # pos % W, W = 2^m
    else:
        col = jax.lax.rem(pos, W)
    # Hoisted masks: k row masks + k column masks (combined with one AND per tap).
    row_mask = [jnp.logical_and(pos >= (pad - di) * W, pos < (H - di + pad) * W)
                for di in range(k)]
    col_mask = [jnp.logical_and(col >= pad - dj, col < W - dj + pad)
                for dj in range(k)]
    acc = None                                                     # register-resident
    for di in range(k):
        oi = di - pad
        for dj in range(k):
            oj = dj - pad
            tap = taps[:, di * k + dj:di * k + dj + 1]             # (Nb*Cexp, 1)
            if oi == 0 and oj == 0:
                # Only the centre tap may skip masking (guarded in the wrapper).
                shifted = y2
            else:
                shift = (-(oi * W + oj)) % L
                mask = jnp.logical_and(row_mask[di], col_mask[dj])
                shifted = jnp.where(mask, pltpu.roll(y2, shift=shift, axis=1), 0.0)
            term = shifted * tap
            acc = term if acc is None else acc + term
    y = acc.reshape(Nb, Cexp, L)
    bias1 = aux_ref[0:Cexp, 1 + kk:2 + kk]                         # (Cexp, 1)
    y = y + bias1[None, :, :]
    y = _swish(y)

    # ---- squeeze & excitation (VPU/XLU only: broadcast MACs + axis reductions) ----
    w_sr = sew_ref[0:Cexp, 0:Csq]                                  # (Cexp, Csq)
    w_se = sew_ref[0:Cexp, Csq:2 * Csq]                            # (Cexp, Csq)
    b_sr = sew_ref[Cexp:Cexp + 1, 0:Csq]                           # (1, Csq)
    b_se = sew_ref[Cexp + 1:Cexp + 2, 0:Cexp]                      # (1, Cexp)
    se = jnp.mean(y, axis=2)                                       # (Nb, Cexp)
    se_r = jnp.sum(se[:, :, None] * w_sr[None, :, :], axis=1) + b_sr      # (Nb, Csq)
    se_r = _swish(se_r)
    se_e = jnp.sum(se_r[:, None, :] * w_se[None, :, :], axis=2) + b_se    # (Nb, Cexp)
    y = y * _sigmoid(se_e)[:, :, None]

    # ---- project 1x1 conv on the MXU (bn2 scale pre-folded) + bias + skip ----
    w_pr = w_pr_ref[...]                                           # (Cout, Cexp) bf16
    bias2 = aux_ref[0:Cout, 2 + kk:3 + kk]                         # (Cout, 1)
    y_bf = y.astype(jnp.bfloat16)
    for n in range(Nb):
        z = jnp.dot(w_pr, y_bf[n], preferred_element_type=jnp.float32)    # (Cout, L)
        z = z + bias2
        if apply_skip:
            z = z + x_ref[n].astype(jnp.float32)   # re-read x from VMEM only here
        o_ref[n] = z.astype(o_ref.dtype)           # lane-dense store (L on lanes)


def pack_params(p, k, *, vpu_expand):
    """Pack the 10 logical weight arrays into 4 lane-dense kernel operands."""
    Cexp, Cin = p["w_exp"].shape
    Cout = p["w_pr"].shape[0]
    Csq = p["w_sr"].shape[1]
    kk = k * k

    R = max(Cexp, Cout)
    aux = jnp.zeros((R, kk + 3), jnp.float32)
    aux = aux.at[:Cexp, 0].set(p["bias0"])
    aux = aux.at[:Cexp, 1:1 + kk].set(p["w_dw"])
    aux = aux.at[:Cexp, 1 + kk].set(p["bias1"])
    aux = aux.at[:Cout, 2 + kk].set(p["bias2"])

    SW = max(2 * Csq, Cexp)
    sew = jnp.zeros((Cexp + 2, SW), jnp.float32)
    sew = sew.at[:Cexp, 0:Csq].set(p["w_sr"])
    sew = sew.at[:Cexp, Csq:2 * Csq].set(p["w_se"])
    sew = sew.at[Cexp, 0:Csq].set(p["b_sr"])
    sew = sew.at[Cexp + 1, 0:Cexp].set(p["b_se"])

    w_exp = p["w_exp"] if vpu_expand else p["w_exp"].astype(jnp.bfloat16)
    w_pr = p["w_pr"].astype(jnp.bfloat16)
    return w_exp, aux, sew, w_pr


def mbconv_forward(x_nchw, params, *, kernel_size, stride, id_skip,
                   images_per_step=None):
    assert stride == 1, "only stride=1 depthwise conv implemented"
    N, Cin, H, W = x_nchw.shape
    L = H * W
    k = kernel_size
    pad = (k - 1) // 2
    # Guard for the unmasked shift==0 fast path: every non-centre tap must have a
    # non-zero, sub-image-sized roll offset.
    assert max(pad, k - 1 - pad) < min(H, W), "depthwise taps must stay within one image"

    Cexp = params["w_exp"].shape[0]
    Cout = params["w_pr"].shape[0]
    Csq = params["w_sr"].shape[1]
    apply_skip = bool(id_skip and stride == 1 and Cin == Cout)
    vpu_expand = Cin <= 8

    if images_per_step is None:
        # Biggest divisor of N up to 8 -> fewer, fatter grid steps.
        # NOTE(v7x): with 2 TensorCores prefer a config that keeps >=2 "parallel"
        # grid steps (e.g. images_per_step=N//2) once N is large enough.
        images_per_step = next(d for d in range(min(N, 8), 0, -1) if N % d == 0)
    Nb = images_per_step
    assert N % Nb == 0

    # bf16 activations at the HBM boundary (halves DMA bytes); f32 math in-kernel.
    x = x_nchw.astype(jnp.bfloat16).reshape(N, Cin, L)        # NCHW kept, no transposes
    w_exp, aux, sew, w_pr = pack_params(params, k, vpu_expand=vpu_expand)

    kern = functools.partial(
        mbconv_kernel, k=k, pad=pad, H=H, W=W, Nb=Nb,
        Cin=Cin, Cexp=Cexp, Cout=Cout, Csq=Csq,
        vpu_expand=vpu_expand, apply_skip=apply_skip)

    def full_spec(a):
        return pl.BlockSpec(a.shape, lambda g, _nd=a.ndim: (0,) * _nd)

    flops = 2 * N * L * (Cexp * Cin + Cexp * k * k + Cout * Cexp) + 4 * N * Cexp * Csq
    transcendentals = 3 * N * Cexp * L + N * (Cexp + 2 * Csq)
    bytes_accessed = 2 * (N * Cin * L + N * Cout * L) + int(
        sum(a.size * a.dtype.itemsize for a in (w_exp, aux, sew, w_pr)))

    out = pl.pallas_call(
        kern,
        out_shape=jax.ShapeDtypeStruct((N, Cout, L), jnp.bfloat16),
        grid_spec=pltpu.PrefetchScalarGridSpec(
            num_scalar_prefetch=0,
            grid=(N // Nb,),
            in_specs=[pl.BlockSpec((Nb, Cin, L), lambda g: (g, 0, 0)),
                      full_spec(w_exp), full_spec(aux),
                      full_spec(sew), full_spec(w_pr)],
            out_specs=pl.BlockSpec((Nb, Cout, L), lambda g: (g, 0, 0)),
        ),
        compiler_params=pltpu.CompilerParams(
            dimension_semantics=("parallel",),
            vmem_limit_bytes=32 * 1024 * 1024),
        cost_estimate=pl.CostEstimate(
            flops=flops, transcendentals=transcendentals,
            bytes_accessed=bytes_accessed),
    )(x, w_exp, aux, sew, w_pr)
    return out.reshape(N, Cout, H, W)


def init_params(key, Cin, expand_ratio, k, se_ratio, Cout, eps):
    """Random MBConv params with eval-mode BN scales pre-folded into the conv weights."""
    Cexp = Cin * expand_ratio
    Csq = max(1, int(Cin * se_ratio))
    keys = jax.random.split(key, 12)

    def nrm(kk_, shape, scale=0.2):
        return (scale * jax.random.normal(kk_, shape)).astype(jnp.float32)

    def bn(kk_, C):
        k1, k2, k3, k4 = jax.random.split(kk_, 4)
        gamma = 1.0 + 0.1 * jax.random.normal(k1, (C,))
        beta = 0.1 * jax.random.normal(k2, (C,))
        mean = 0.1 * jax.random.normal(k3, (C,))
        var = jax.random.uniform(k4, (C,), minval=0.5, maxval=1.5)
        scale = gamma / jnp.sqrt(var + eps)
        bias = beta - mean * scale
        return scale.astype(jnp.float32), bias.astype(jnp.float32)

    s0, b0 = bn(keys[7], Cexp)
    s1, b1 = bn(keys[8], Cexp)
    s2, b2 = bn(keys[9], Cout)

    p = {
        # 1x1 convs stored (out_ch, in_ch); BN scale folded in f32 (exact).
        "w_exp": nrm(keys[0], (Cexp, Cin)) * s0[:, None],
        "bias0": b0,
        # depthwise taps, channels on sublanes: (Cexp, k*k); bn1 scale folded (exact).
        "w_dw":  nrm(keys[1], (Cexp, k * k)) * s1[:, None],
        "bias1": b1,
        # squeeze-excitation (1x1 convs with bias, f32, run on VPU/XLU)
        "w_sr": nrm(keys[2], (Cexp, Csq)),
        "b_sr": nrm(keys[3], (Csq,)),
        "w_se": nrm(keys[4], (Cexp, Csq)),
        "b_se": nrm(keys[5], (Cexp,)),
        "w_pr": nrm(keys[6], (Cout, Cexp)) * s2[:, None],
        "bias2": b2,
    }
    return p


def mbconv_ref(x_nchw_bf16, p, *, k, stride, id_skip, vpu_expand=True):
    """Pure-JAX reference mirroring the kernel's numerics (bf16 boundaries included)."""
    x = x_nchw_bf16
    N, Cin, H, W = x.shape
    L = H * W
    xf = x.reshape(N, Cin, L)
    Cexp = p["w_exp"].shape[0]

    if vpu_expand:
        y = jnp.einsum("ec,ncl->nel", p["w_exp"], xf.astype(jnp.float32))
    else:
        y = jnp.einsum("ec,ncl->nel", p["w_exp"].astype(jnp.bfloat16), xf,
                       preferred_element_type=jnp.float32)
    y = y + p["bias0"][None, :, None]
    y = _swish(y)

    y = y.reshape(N, Cexp, H, W)
    pad_total = k - 1
    pt = pad_total // 2
    yp = jnp.pad(y, ((0, 0), (0, 0), (pt, pad_total - pt), (pt, pad_total - pt)))
    acc = jnp.zeros_like(y)
    for di in range(k):
        for dj in range(k):
            tap = p["w_dw"][:, di * k + dj]
            acc = acc + yp[:, :, di:di + H, dj:dj + W] * tap[None, :, None, None]
    y = acc.reshape(N, Cexp, L)
    y = y + p["bias1"][None, :, None]
    y = _swish(y)

    se = jnp.mean(y, axis=2)                                   # (N, Cexp)
    se_r = se @ p["w_sr"] + p["b_sr"][None, :]                 # (N, Csq)
    se_r = _swish(se_r)
    se_e = se_r @ p["w_se"].T + p["b_se"][None, :]             # (N, Cexp)
    y = y * _sigmoid(se_e)[:, :, None]

    z = jnp.einsum("oc,ncl->nol", p["w_pr"].astype(jnp.bfloat16),
                   y.astype(jnp.bfloat16), preferred_element_type=jnp.float32)
    z = z + p["bias2"][None, :, None]
    if id_skip and stride == 1 and Cin == z.shape[1]:
        z = z + xf.astype(jnp.float32)
    return z.reshape(N, -1, H, W)


if __name__ == "__main__":
    key = jax.random.PRNGKey(0)
    kx, kp = jax.random.split(key)

    # BlockArgs: input_filters=4, output_filters=4, expand_ratio=4,
    #            kernel_size=3, stride=1, se_ratio=0.25, id_skip=True
    N, Cin, H, W = 2, 4, 16, 16
    expand_ratio, k, stride, se_ratio, Cout = 4, 3, 1, 0.25, 4
    bn_eps = 1e-3

    x = jax.random.normal(kx, (N, Cin, H, W), jnp.float32).astype(jnp.bfloat16)
    params = init_params(kp, Cin, expand_ratio, k, se_ratio, Cout, bn_eps)

    out = mbconv_forward(x, params, kernel_size=k, stride=stride, id_skip=True)
    out = jax.block_until_ready(out)

    ref = mbconv_ref(x, params, k=k, stride=stride, id_skip=True,
                     vpu_expand=(Cin <= 8))
    assert out.shape == (N, Cout, H, W)
    err = float(jnp.max(jnp.abs(out.astype(jnp.float32) - ref)))
    assert err < 3e-2, f"max abs err {err}"

    print("KERNEL_OK")
</pallas_src>

<mosaic_0001>
module attributes {stable_mosaic.version = 11 : i64} {
  func.func @mbconv_kernel(%arg0: i32, %arg1: memref<2x4x256xbf16, #tpu.memory_space<vmem>>, %arg2: memref<16x4xf32, #tpu.memory_space<vmem>>, %arg3: memref<16x12xf32, #tpu.memory_space<vmem>>, %arg4: memref<18x16xf32, #tpu.memory_space<vmem>>, %arg5: memref<4x16xbf16, #tpu.memory_space<vmem>>, %arg6: memref<2x4x256xbf16, #tpu.memory_space<vmem>>) attributes {dimension_semantics = [#tpu.dimension_semantics<parallel>], iteration_bounds = array<i64: 1>, scalar_prefetch = 0 : i64, scratch_operands = 0 : i64, tpu.core_type = #tpu.core_type<tc>, window_params = [{transform_indices = @transform_0, window_bounds = array<i64: 2, 4, 256>}, {pipeline_mode = #tpu.pipeline_mode<synchronous>, transform_indices = @transform_1, window_bounds = array<i64: 16, 4>}, {pipeline_mode = #tpu.pipeline_mode<synchronous>, transform_indices = @transform_2, window_bounds = array<i64: 16, 12>}, {pipeline_mode = #tpu.pipeline_mode<synchronous>, transform_indices = @transform_3, window_bounds = array<i64: 18, 16>}, {pipeline_mode = #tpu.pipeline_mode<synchronous>, transform_indices = @transform_4, window_bounds = array<i64: 4, 16>}, {transform_indices = @transform_5, window_bounds = array<i64: 2, 4, 256>}]} {
    %c0 = arith.constant 0 : index
    %c0_0 = arith.constant 0 : index
    %0 = vector.load %arg3[%c0, %c0_0] : memref<16x12xf32, #tpu.memory_space<vmem>>, vector<16x1xf32>
    %c0_1 = arith.constant 0 : index
    %c0_2 = arith.constant 0 : index
    %1 = vector.load %arg2[%c0_1, %c0_2] : memref<16x4xf32, #tpu.memory_space<vmem>>, vector<16x4xf32>
    %c0_3 = arith.constant 0 : index
    %c0_4 = arith.constant 0 : index
    %c0_5 = arith.constant 0 : index
    %2 = vector.load %arg1[%c0_3, %c0_4, %c0_5] : memref<2x4x256xbf16, #tpu.memory_space<vmem>>, vector<2x1x256xbf16>
    %3 = arith.extf %2 : vector<2x1x256xbf16> to vector<2x1x256xf32>
    %4 = vector.extract_strided_slice %1 {offsets = [0, 0], sizes = [16, 1], strides = [1, 1]} : vector<16x4xf32> to vector<16x1xf32>
    %5 = vector.shape_cast %4 : vector<16x1xf32> to vector<1x16x1xf32>
    %6 = vector.broadcast %5 : vector<1x16x1xf32> to vector<2x16x256xf32>
    %7 = vector.broadcast %3 : vector<2x1x256xf32> to vector<2x16x256xf32>
    %8 = arith.mulf %6, %7 : vector<2x16x256xf32>
    %c0_6 = arith.constant 0 : index
    %c1 = arith.constant 1 : index
    %c0_7 = arith.constant 0 : index
    %9 = vector.load %arg1[%c0_6, %c1, %c0_7] : memref<2x4x256xbf16, #tpu.memory_space<vmem>>, vector<2x1x256xbf16>
    %10 = arith.extf %9 : vector<2x1x256xbf16> to vector<2x1x256xf32>
    %11 = vector.extract_strided_slice %1 {offsets = [0, 1], sizes = [16, 1], strides = [1, 1]} : vector<16x4xf32> to vector<16x1xf32>
    %12 = vector.shape_cast %11 : vector<16x1xf32> to vector<1x16x1xf32>
    %13 = vector.broadcast %12 : vector<1x16x1xf32> to vector<2x16x256xf32>
    %14 = vector.broadcast %10 : vector<2x1x256xf32> to vector<2x16x256xf32>
    %15 = arith.mulf %13, %14 : vector<2x16x256xf32>
    %16 = arith.addf %8, %15 : vector<2x16x256xf32>
    %c0_8 = arith.constant 0 : index
    %c2 = arith.constant 2 : index
    %c0_9 = arith.constant 0 : index
    %17 = vector.load %arg1[%c0_8, %c2, %c0_9] : memref<2x4x256xbf16, #tpu.memory_space<vmem>>, vector<2x1x256xbf16>
    %18 = arith.extf %17 : vector<2x1x256xbf16> to vector<2x1x256xf32>
    %19 = vector.extract_strided_slice %1 {offsets = [0, 2], sizes = [16, 1], strides = [1, 1]} : vector<16x4xf32> to vector<16x1xf32>
    %20 = vector.shape_cast %19 : vector<16x1xf32> to vector<1x16x1xf32>
    %21 = vector.broadcast %20 : vector<1x16x1xf32> to vector<2x16x256xf32>
    %22 = vector.broadcast %18 : vector<2x1x256xf32> to vector<2x16x256xf32>
    %23 = arith.mulf %21, %22 : vector<2x16x256xf32>
    %24 = arith.addf %16, %23 : vector<2x16x256xf32>
    %c0_10 = arith.constant 0 : index
    %c3 = arith.constant 3 : index
    %c0_11 = arith.constant 0 : index
    %25 = vector.load %arg1[%c0_10, %c3, %c0_11] : memref<2x4x256xbf16, #tpu.memory_space<vmem>>, vector<2x1x256xbf16>
    %26 = arith.extf %25 : vector<2x1x256xbf16> to vector<2x1x256xf32>
    %27 = vector.extract_strided_slice %1 {offsets = [0, 3], sizes = [16, 1], strides = [1, 1]} : vector<16x4xf32> to vector<16x1xf32>
    %28 = vector.shape_cast %27 : vector<16x1xf32> to vector<1x16x1xf32>
    %29 = vector.broadcast %28 : vector<1x16x1xf32> to vector<2x16x256xf32>
    %30 = vector.broadcast %26 : vector<2x1x256xf32> to vector<2x16x256xf32>
    %31 = arith.mulf %29, %30 : vector<2x16x256xf32>
    %32 = arith.addf %24, %31 : vector<2x16x256xf32>
    %33 = vector.shape_cast %0 : vector<16x1xf32> to vector<1x16x1xf32>
    %34 = vector.broadcast %33 : vector<1x16x1xf32> to vector<2x16x256xf32>
    %35 = arith.addf %32, %34 : vector<2x16x256xf32>
    %cst = arith.constant 5.000000e-01 : f32
    %36 = vector.broadcast %cst : f32 to vector<2x16x256xf32>
    %37 = arith.mulf %36, %35 : vector<2x16x256xf32>
    %38 = math.tanh %37 : vector<2x16x256xf32>
    %cst_12 = arith.constant 1.000000e+00 : f32
    %39 = vector.broadcast %cst_12 : f32 to vector<2x16x256xf32>
    %40 = arith.addf %38, %39 : vector<2x16x256xf32>
    %cst_13 = arith.constant 5.000000e-01 : f32
    %41 = vector.broadcast %cst_13 : f32 to vector<2x16x256xf32>
    %42 = arith.mulf %41, %40 : vector<2x16x256xf32>
    %43 = arith.mulf %35, %42 : vector<2x16x256xf32>
    %44 = vector.shape_cast %43 : vector<2x16x256xf32> to vector<32x256xf32>
    %c0_14 = arith.constant 0 : index
    %c1_15 = arith.constant 1 : index
    %45 = vector.load %arg3[%c0_14, %c1_15] : memref<16x12xf32, #tpu.memory_space<vmem>>, vector<16x9xf32>
    %46 = tpu.concatenate %45, %45 in 0 : vector<16x9xf32>, vector<16x9xf32> -> vector<32x9xf32>
    %47 = tpu.iota {dimensions = array<i32: 1>} : vector<1x256xi32>
    %c15_i32 = arith.constant 15 : i32
    %48 = vector.broadcast %c15_i32 : i32 to vector<1x256xi32>
    %49 = arith.andi %47, %48 : vector<1x256xi32>
    %c16_i32 = arith.constant 16 : i32
    %50 = vector.broadcast %c16_i32 : i32 to vector<1x256xi32>
    %51 = arith.cmpi sge, %47, %50 : vector<1x256xi32>
    %c272_i32 = arith.constant 272 : i32
    %52 = vector.broadcast %c272_i32 : i32 to vector<1x256xi32>
    %53 = arith.cmpi slt, %47, %52 : vector<1x256xi32>
    %54 = arith.andi %51, %53 : vector<1x256xi1>
    %c0_i32 = arith.constant 0 : i32
    %55 = vector.broadcast %c0_i32 : i32 to vector<1x256xi32>
    %56 = arith.cmpi sge, %47, %55 : vector<1x256xi32>
    %c256_i32 = arith.constant 256 : i32
    %57 = vector.broadcast %c256_i32 : i32 to vector<1x256xi32>
    %58 = arith.cmpi slt, %47, %57 : vector<1x256xi32>
    %59 = arith.andi %56, %58 : vector<1x256xi1>
    %c-16_i32 = arith.constant -16 : i32
    %60 = vector.broadcast %c-16_i32 : i32 to vector<1x256xi32>
    %61 = arith.cmpi sge, %47, %60 : vector<1x256xi32>
    %c240_i32 = arith.constant 240 : i32
    %62 = vector.broadcast %c240_i32 : i32 to vector<1x256xi32>
    %63 = arith.cmpi slt, %47, %62 : vector<1x256xi32>
    %64 = arith.andi %61, %63 : vector<1x256xi1>
    %c1_i32 = arith.constant 1 : i32
    %65 = vector.broadcast %c1_i32 : i32 to vector<1x256xi32>
    %66 = arith.cmpi sge, %49, %65 : vector<1x256xi32>
    %c17_i32 = arith.constant 17 : i32
    %67 = vector.broadcast %c17_i32 : i32 to vector<1x256xi32>
    %68 = arith.cmpi slt, %49, %67 : vector<1x256xi32>
    %69 = arith.andi %66, %68 : vector<1x256xi1>
    %c0_i32_16 = arith.constant 0 : i32
    %70 = vector.broadcast %c0_i32_16 : i32 to vector<1x256xi32>
    %71 = arith.cmpi sge, %49, %70 : vector<1x256xi32>
    %c16_i32_17 = arith.constant 16 : i32
    %72 = vector.broadcast %c16_i32_17 : i32 to vector<1x256xi32>
    %73 = arith.cmpi slt, %49, %72 : vector<1x256xi32>
    %74 = arith.andi %71, %73 : vector<1x256xi1>
    %c-1_i32 = arith.constant -1 : i32
    %75 = vector.broadcast %c-1_i32 : i32 to vector<1x256xi32>
    %76 = arith.cmpi sge, %49, %75 : vector<1x256xi32>
    %c15_i32_18 = arith.constant 15 : i32
    %77 = vector.broadcast %c15_i32_18 : i32 to vector<1x256xi32>
    %78 = arith.cmpi slt, %49, %77 : vector<1x256xi32>
    %79 = arith.andi %76, %78 : vector<1x256xi1>
    %80 = vector.extract_strided_slice %46 {offsets = [0, 0], sizes = [32, 1], strides = [1, 1]} : vector<32x9xf32> to vector<32x1xf32>
    %81 = arith.andi %54, %69 : vector<1x256xi1>
    %c17_i32_19 = arith.constant 17 : i32
    %82 = tpu.dynamic_rotate %44 by %c17_i32_19 dim 1 : vector<32x256xf32>, i32 -> vector<32x256xf32>
    %cst_20 = arith.constant 0.000000e+00 : f32
    %83 = vector.shape_cast %81 : vector<1x256xi1> to vector<1x256xi1>
    %84 = vector.broadcast %83 : vector<1x256xi1> to vector<32x256xi1>
    %85 = vector.broadcast %cst_20 : f32 to vector<32x256xf32>
    %86 = arith.select %84, %82, %85 : vector<32x256xi1>, vector<32x256xf32>
    %87 = vector.broadcast %80 : vector<32x1xf32> to vector<32x256xf32>
    %88 = arith.mulf %86, %87 : vector<32x256xf32>
    %89 = vector.extract_strided_slice %46 {offsets = [0, 1], sizes = [32, 1], strides = [1, 1]} : vector<32x9xf32> to vector<32x1xf32>
    %90 = arith.andi %54, %74 : vector<1x256xi1>
    %c16_i32_21 = arith.constant 16 : i32
    %91 = tpu.dynamic_rotate %44 by %c16_i32_21 dim 1 : vector<32x256xf32>, i32 -> vector<32x256xf32>
    %cst_22 = arith.constant 0.000000e+00 : f32
    %92 = vector.shape_cast %90 : vector<1x256xi1> to vector<1x256xi1>
    %93 = vector.broadcast %92 : vector<1x256xi1> to vector<32x256xi1>
    %94 = vector.broadcast %cst_22 : f32 to vector<32x256xf32>
    %95 = arith.select %93, %91, %94 : vector<32x256xi1>, vector<32x256xf32>
    %96 = vector.broadcast %89 : vector<32x1xf32> to vector<32x256xf32>
    %97 = arith.mulf %95, %96 : vector<32x256xf32>
    %98 = arith.addf %88, %97 : vector<32x256xf32>
    %99 = vector.extract_strided_slice %46 {offsets = [0, 2], sizes = [32, 1], strides = [1, 1]} : vector<32x9xf32> to vector<32x1xf32>
    %100 = arith.andi %54, %79 : vector<1x256xi1>
    %c15_i32_23 = arith.constant 15 : i32
    %101 = tpu.dynamic_rotate %44 by %c15_i32_23 dim 1 : vector<32x256xf32>, i32 -> vector<32x256xf32>
    %cst_24 = arith.constant 0.000000e+00 : f32
    %102 = vector.shape_cast %100 : vector<1x256xi1> to vector<1x256xi1>
    %103 = vector.broadcast %102 : vector<1x256xi1> to vector<32x256xi1>
    %104 = vector.broadcast %cst_24 : f32 to vector<32x256xf32>
    %105 = arith.select %103, %101, %104 : vector<32x256xi1>, vector<32x256xf32>
    %106 = vector.broadcast %99 : vector<32x1xf32> to vector<32x256xf32>
    %107 = arith.mulf %105, %106 : vector<32x256xf32>
    %108 = arith.addf %98, %107 : vector<32x256xf32>
    %109 = vector.extract_strided_slice %46 {offsets = [0, 3], sizes = [32, 1], strides = [1, 1]} : vector<32x9xf32> to vector<32x1xf32>
    %110 = arith.andi %59, %69 : vector<1x256xi1>
    %c1_i32_25 = arith.constant 1 : i32
    %111 = tpu.dynamic_rotate %44 by %c1_i32_25 dim 1 : vector<32x256xf32>, i32 -> vector<32x256xf32>
    %cst_26 = arith.constant 0.000000e+00 : f32
    %112 = vector.shape_cast %110 : vector<1x256xi1> to vector<1x256xi1>
    %113 = vector.broadcast %112 : vector<1x256xi1> to vector<32x256xi1>
    %114 = vector.broadcast %cst_26 : f32 to vector<32x256xf32>
    %115 = arith.select %113, %111, %114 : vector<32x256xi1>, vector<32x256xf32>
    %116 = vector.broadcast %109 : vector<32x1xf32> to vector<32x256xf32>
    %117 = arith.mulf %115, %116 : vector<32x256xf32>
    %118 = arith.addf %108, %117 : vector<32x256xf32>
    %119 = vector.extract_strided_slice %46 {offsets = [0, 4], sizes = [32, 1], strides = [1, 1]} : vector<32x9xf32> to vector<32x1xf32>
    %120 = vector.broadcast %119 : vector<32x1xf32> to vector<32x256xf32>
    %121 = arith.mulf %44, %120 : vector<32x256xf32>
    %122 = arith.addf %118, %121 : vector<32x256xf32>
    %123 = vector.extract_strided_slice %46 {offsets = [0, 5], sizes = [32, 1], strides = [1, 1]} : vector<32x9xf32> to vector<32x1xf32>
    %124 = arith.andi %59, %79 : vector<1x256xi1>
    %c255_i32 = arith.constant 255 : i32
    %125 = tpu.dynamic_rotate %44 by %c255_i32 dim 1 : vector<32x256xf32>, i32 -> vector<32x256xf32>
    %cst_27 = arith.constant 0.000000e+00 : f32
    %126 = vector.shape_cast %124 : vector<1x256xi1> to vector<1x256xi1>
    %127 = vector.broadcast %126 : vector<1x256xi1> to vector<32x256xi1>
    %128 = vector.broadcast %cst_27 : f32 to vector<32x256xf32>
    %129 = arith.select %127, %125, %128 : vector<32x256xi1>, vector<32x256xf32>
    %130 = vector.broadcast %123 : vector<32x1xf32> to vector<32x256xf32>
    %131 = arith.mulf %129, %130 : vector<32x256xf32>
    %132 = arith.addf %122, %131 : vector<32x256xf32>
    %133 = vector.extract_strided_slice %46 {offsets = [0, 6], sizes = [32, 1], strides = [1, 1]} : vector<32x9xf32> to vector<32x1xf32>
    %134 = arith.andi %64, %69 : vector<1x256xi1>
    %c241_i32 = arith.constant 241 : i32
    %135 = tpu.dynamic_rotate %44 by %c241_i32 dim 1 : vector<32x256xf32>, i32 -> vector<32x256xf32>
    %cst_28 = arith.constant 0.000000e+00 : f32
    %136 = vector.shape_cast %134 : vector<1x256xi1> to vector<1x256xi1>
    %137 = vector.broadcast %136 : vector<1x256xi1> to vector<32x256xi1>
    %138 = vector.broadcast %cst_28 : f32 to vector<32x256xf32>
    %139 = arith.select %137, %135, %138 : vector<32x256xi1>, vector<32x256xf32>
    %140 = vector.broadcast %133 : vector<32x1xf32> to vector<32x256xf32>
    %141 = arith.mulf %139, %140 : vector<32x256xf32>
    %142 = arith.addf %132, %141 : vector<32x256xf32>
    %143 = vector.extract_strided_slice %46 {offsets = [0, 7], sizes = [32, 1], strides = [1, 1]} : vector<32x9xf32> to vector<32x1xf32>
    %144 = arith.andi %64, %74 : vector<1x256xi1>
    %c240_i32_29 = arith.constant 240 : i32
    %145 = tpu.dynamic_rotate %44 by %c240_i32_29 dim 1 : vector<32x256xf32>, i32 -> vector<32x256xf32>
    %cst_30 = arith.constant 0.000000e+00 : f32
    %146 = vector.shape_cast %144 : vector<1x256xi1> to vector<1x256xi1>
    %147 = vector.broadcast %146 : vector<1x256xi1> to vector<32x256xi1>
    %148 = vector.broadcast %cst_30 : f32 to vector<32x256xf32>
    %149 = arith.select %147, %145, %148 : vector<32x256xi1>, vector<32x256xf32>
    %150 = vector.broadcast %143 : vector<32x1xf32> to vector<32x256xf32>
    %151 = arith.mulf %149, %150 : vector<32x256xf32>
    %152 = arith.addf %142, %151 : vector<32x256xf32>
    %153 = vector.extract_strided_slice %46 {offsets = [0, 8], sizes = [32, 1], strides = [1, 1]} : vector<32x9xf32> to vector<32x1xf32>
    %154 = arith.andi %64, %79 : vector<1x256xi1>
    %c239_i32 = arith.constant 239 : i32
    %155 = tpu.dynamic_rotate %44 by %c239_i32 dim 1 : vector<32x256xf32>, i32 -> vector<32x256xf32>
    %cst_31 = arith.constant 0.000000e+00 : f32
    %156 = vector.shape_cast %154 : vector<1x256xi1> to vector<1x256xi1>
    %157 = vector.broadcast %156 : vector<1x256xi1> to vector<32x256xi1>
    %158 = vector.broadcast %cst_31 : f32 to vector<32x256xf32>
    %159 = arith.select %157, %155, %158 : vector<32x256xi1>, vector<32x256xf32>
    %160 = vector.broadcast %153 : vector<32x1xf32> to vector<32x256xf32>
    %161 = arith.mulf %159, %160 : vector<32x256xf32>
    %162 = arith.addf %152, %161 : vector<32x256xf32>
    %163 = vector.shape_cast %162 : vector<32x256xf32> to vector<2x16x256xf32>
    %c0_32 = arith.constant 0 : index
    %c10 = arith.constant 10 : index
    %164 = vector.load %arg3[%c0_32, %c10] : memref<16x12xf32, #tpu.memory_space<vmem>>, vector<16x1xf32>
    %165 = vector.shape_cast %164 : vector<16x1xf32> to vector<1x16x1xf32>
    %166 = vector.broadcast %165 : vector<1x16x1xf32> to vector<2x16x256xf32>
    %167 = arith.addf %163, %166 : vector<2x16x256xf32>
    %cst_33 = arith.constant 5.000000e-01 : f32
    %168 = vector.broadcast %cst_33 : f32 to vector<2x16x256xf32>
    %169 = arith.mulf %168, %167 : vector<2x16x256xf32>
    %170 = math.tanh %169 : vector<2x16x256xf32>
    %cst_34 = arith.constant 1.000000e+00 : f32
    %171 = vector.broadcast %cst_34 : f32 to vector<2x16x256xf32>
    %172 = arith.addf %170, %171 : vector<2x16x256xf32>
    %cst_35 = arith.constant 5.000000e-01 : f32
    %173 = vector.broadcast %cst_35 : f32 to vector<2x16x256xf32>
    %174 = arith.mulf %173, %172 : vector<2x16x256xf32>
    %175 = arith.mulf %167, %174 : vector<2x16x256xf32>
    %c0_36 = arith.constant 0 : index
    %c0_37 = arith.constant 0 : index
    %176 = vector.load %arg4[%c0_36, %c0_37] : memref<18x16xf32, #tpu.memory_space<vmem>>, vector<16x1xf32>
    %c0_38 = arith.constant 0 : index
    %c1_39 = arith.constant 1 : index
    %177 = vector.load %arg4[%c0_38, %c1_39] : memref<18x16xf32, #tpu.memory_space<vmem>>, vector<16x1xf32>
    %c16 = arith.constant 16 : index
    %c0_40 = arith.constant 0 : index
    %178 = vector.load %arg4[%c16, %c0_40] : memref<18x16xf32, #tpu.memory_space<vmem>>, vector<1x1xf32>
    %c17 = arith.constant 17 : index
    %c0_41 = arith.constant 0 : index
    %179 = vector.load %arg4[%c17, %c0_41] : memref<18x16xf32, #tpu.memory_space<vmem>>, vector<1x16xf32>
    %cst_42 = arith.constant dense<0.000000e+00> : vector<2x16xf32>
    %180 = vector.multi_reduction <add>, %175, %cst_42 [2] : vector<2x16x256xf32> to vector<2x16xf32>
    %cst_43 = arith.constant 2.560000e+02 : f32
    %181 = vector.broadcast %cst_43 : f32 to vector<2x16xf32>
    %182 = arith.divf %180, %181 : vector<2x16xf32>
    %183 = vector.shape_cast %182 : vector<2x16xf32> to vector<2x16x1xf32>
    %184 = vector.shape_cast %176 : vector<16x1xf32> to vector<1x16x1xf32>
    %185 = vector.broadcast %184 : vector<1x16x1xf32> to vector<2x16x1xf32>
    %186 = arith.mulf %183, %185 : vector<2x16x1xf32>
    %cst_44 = arith.constant dense<0.000000e+00> : vector<2x1xf32>
    %187 = vector.multi_reduction <add>, %186, %cst_44 [1] : vector<2x16x1xf32> to vector<2x1xf32>
    %188 = vector.broadcast %178 : vector<1x1xf32> to vector<2x1xf32>
    %189 = arith.addf %187, %188 : vector<2x1xf32>
    %cst_45 = arith.constant 5.000000e-01 : f32
    %190 = vector.broadcast %cst_45 : f32 to vector<2x1xf32>
    %191 = arith.mulf %190, %189 : vector<2x1xf32>
    %192 = math.tanh %191 : vector<2x1xf32>
    %cst_46 = arith.constant 1.000000e+00 : f32
    %193 = vector.broadcast %cst_46 : f32 to vector<2x1xf32>
    %194 = arith.addf %192, %193 : vector<2x1xf32>
    %cst_47 = arith.constant 5.000000e-01 : f32
    %195 = vector.broadcast %cst_47 : f32 to vector<2x1xf32>
    %196 = arith.mulf %195, %194 : vector<2x1xf32>
    %197 = arith.mulf %189, %196 : vector<2x1xf32>
    %198 = vector.shape_cast %197 : vector<2x1xf32> to vector<2x1x1xf32>
    %199 = vector.shape_cast %177 : vector<16x1xf32> to vector<1x16x1xf32>
    %200 = vector.broadcast %198 : vector<2x1x1xf32> to vector<2x16x1xf32>
    %201 = vector.broadcast %199 : vector<1x16x1xf32> to vector<2x16x1xf32>
    %202 = arith.mulf %200, %201 : vector<2x16x1xf32>
    %cst_48 = arith.constant dense<0.000000e+00> : vector<2x16xf32>
    %203 = vector.multi_reduction <add>, %202, %cst_48 [2] : vector<2x16x1xf32> to vector<2x16xf32>
    %204 = vector.broadcast %179 : vector<1x16xf32> to vector<2x16xf32>
    %205 = arith.addf %203, %204 : vector<2x16xf32>
    %cst_49 = arith.constant 5.000000e-01 : f32
    %206 = vector.broadcast %cst_49 : f32 to vector<2x16xf32>
    %207 = arith.mulf %206, %205 : vector<2x16xf32>
    %208 = math.tanh %207 : vector<2x16xf32>
    %cst_50 = arith.constant 1.000000e+00 : f32
    %209 = vector.broadcast %cst_50 : f32 to vector<2x16xf32>
    %210 = arith.addf %208, %209 : vector<2x16xf32>
    %cst_51 = arith.constant 5.000000e-01 : f32
    %211 = vector.broadcast %cst_51 : f32 to vector<2x16xf32>
    %212 = arith.mulf %211, %210 : vector<2x16xf32>
    %213 = vector.shape_cast %212 : vector<2x16xf32> to vector<2x16x1xf32>
    %214 = vector.broadcast %213 : vector<2x16x1xf32> to vector<2x16x256xf32>
    %215 = arith.mulf %175, %214 : vector<2x16x256xf32>
    %c0_52 = arith.constant 0 : index
    %c0_53 = arith.constant 0 : index
    %216 = vector.load %arg5[%c0_52, %c0_53] : memref<4x16xbf16, #tpu.memory_space<vmem>>, vector<4x16xbf16>
    %c0_54 = arith.constant 0 : index
    %c11 = arith.constant 11 : index
    %217 = vector.load %arg3[%c0_54, %c11] : memref<16x12xf32, #tpu.memory_space<vmem>>, vector<4x1xf32>
    %218 = arith.truncf %215 : vector<2x16x256xf32> to vector<2x16x256xbf16>
    %219 = vector.extract_strided_slice %218 {offsets = [0, 0, 0], sizes = [1, 16, 256], strides = [1, 1, 1]} : vector<2x16x256xbf16> to vector<1x16x256xbf16>
    %220 = vector.shape_cast %219 : vector<1x16x256xbf16> to vector<16x256xbf16>
    %cst_55 = arith.constant dense<0.000000e+00> : vector<4x256xf32>
    %221 = tpu.matmul %216, %220, %cst_55 {dimension_numbers = #tpu.dot_dimension_numbers<[1], [0], [0], [1], [0, 0, 1, 1], [], []>} : vector<4x16xbf16>, vector<16x256xbf16>, vector<4x256xf32> -> vector<4x256xf32>
    %222 = vector.broadcast %217 : vector<4x1xf32> to vector<4x256xf32>
    %223 = arith.addf %221, %222 : vector<4x256xf32>
    %c0_56 = arith.constant 0 : index
    %c0_57 = arith.constant 0 : index
    %c0_58 = arith.constant 0 : index
    %224 = vector.load %arg1[%c0_56, %c0_57, %c0_58] : memref<2x4x256xbf16, #tpu.memory_space<vmem>>, vector<1x4x256xbf16>
    %225 = vector.shape_cast %224 : vector<1x4x256xbf16> to vector<4x256xbf16>
    %226 = arith.extf %225 : vector<4x256xbf16> to vector<4x256xf32>
    %227 = arith.addf %223, %226 : vector<4x256xf32>
    %228 = arith.truncf %227 : vector<4x256xf32> to vector<4x256xbf16>
    %c0_59 = arith.constant 0 : index
    %c0_60 = arith.constant 0 : index
    %c0_61 = arith.constant 0 : index
    %229 = vector.load %arg6[%c0_59, %c0_60, %c0_61] : memref<2x4x256xbf16, #tpu.memory_space<vmem>>, vector<1x4x256xbf16>
    %230 = vector.shape_cast %229 : vector<1x4x256xbf16> to vector<4x256xbf16>
    %231 = vector.shape_cast %228 : vector<4x256xbf16> to vector<1x4x256xbf16>
    tpu.vector_store %arg6[%c0_59, %c0_60, %c0_61], %231 {strides = array<i32>} : memref<2x4x256xbf16, #tpu.memory_space<vmem>>, vector<1x4x256xbf16>,
    %232 = vector.extract_strided_slice %218 {offsets = [1, 0, 0], sizes = [1, 16, 256], strides = [1, 1, 1]} : vector<2x16x256xbf16> to vector<1x16x256xbf16>
    %233 = vector.shape_cast %232 : vector<1x16x256xbf16> to vector<16x256xbf16>
    %cst_62 = arith.constant dense<0.000000e+00> : vector<4x256xf32>
    %234 = tpu.matmul %216, %233, %cst_62 {dimension_numbers = #tpu.dot_dimension_numbers<[1], [0], [0], [1], [0, 0, 1, 1], [], []>} : vector<4x16xbf16>, vector<16x256xbf16>, vector<4x256xf32> -> vector<4x256xf32>
    %235 = vector.broadcast %217 : vector<4x1xf32> to vector<4x256xf32>
    %236 = arith.addf %234, %235 : vector<4x256xf32>
    %c1_63 = arith.constant 1 : index
    %c0_64 = arith.constant 0 : index
    %c0_65 = arith.constant 0 : index
    %237 = vector.load %arg1[%c1_63, %c0_64, %c0_65] : memref<2x4x256xbf16, #tpu.memory_space<vmem>>, vector<1x4x256xbf16>
    %238 = vector.shape_cast %237 : vector<1x4x256xbf16> to vector<4x256xbf16>
    %239 = arith.extf %238 : vector<4x256xbf16> to vector<4x256xf32>
    %240 = arith.addf %236, %239 : vector<4x256xf32>
    %241 = arith.truncf %240 : vector<4x256xf32> to vector<4x256xbf16>
    %c1_66 = arith.constant 1 : index
    %c0_67 = arith.constant 0 : index
    %c0_68 = arith.constant 0 : index
    %242 = vector.load %arg6[%c1_66, %c0_67, %c0_68] : memref<2x4x256xbf16, #tpu.memory_space<vmem>>, vector<1x4x256xbf16>
    %243 = vector.shape_cast %242 : vector<1x4x256xbf16> to vector<4x256xbf16>
    %244 = vector.shape_cast %241 : vector<4x256xbf16> to vector<1x4x256xbf16>
    tpu.vector_store %arg6[%c1_66, %c0_67, %c0_68], %244 {strides = array<i32>} : memref<2x4x256xbf16, #tpu.memory_space<vmem>>, vector<1x4x256xbf16>,
    return
  }
  func.func @transform_0(%arg0: i32) -> (i32, i32, i32) {
    %c0_i32 = arith.constant 0 : i32
    %c0_i32_0 = arith.constant 0 : i32
    %c0_i32_1 = arith.constant 0 : i32
    return %arg0, %c0_i32, %c0_i32_0 : i32, i32, i32
  }
  func.func @transform_1(%arg0: i32) -> (i32, i32) {
    %c0_i32 = arith.constant 0 : i32
    %c0_i32_0 = arith.constant 0 : i32
    %c0_i32_1 = arith.constant 0 : i32
    return %c0_i32, %c0_i32_0 : i32, i32
  }
  func.func @transform_2(%arg0: i32) -> (i32, i32) {
    %c0_i32 = arith.constant 0 : i32
    %c0_i32_0 = arith.constant 0 : i32
    %c0_i32_1 = arith.constant 0 : i32
    return %c0_i32, %c0_i32_0 : i32, i32
  }
  func.func @transform_3(%arg0: i32) -> (i32, i32) {
    %c0_i32 = arith.constant 0 : i32
    %c0_i32_0 = arith.constant 0 : i32
    %c0_i32_1 = arith.constant 0 : i32
    return %c0_i32, %c0_i32_0 : i32, i32
  }
  func.func @transform_4(%arg0: i32) -> (i32, i32) {
    %c0_i32 = arith.constant 0 : i32
    %c0_i32_0 = arith.constant 0 : i32
    %c0_i32_1 = arith.constant 0 : i32
    return %c0_i32, %c0_i32_0 : i32, i32
  }
  func.func @transform_5(%arg0: i32) -> (i32, i32, i32) {
    %c0_i32 = arith.constant 0 : i32
    %c0_i32_0 = arith.constant 0 : i32
    %c0_i32_1 = arith.constant 0 : i32
    return %arg0, %c0_i32, %c0_i32_0 : i32, i32, i32
  }
}

</mosaic_0001>

<bundles_post_ra>
// kernel: tpu_custom_call.1
= control target key start
LH: loop header
LB: loop body
LE: loop exit
PB: predicated region body
PF: predicated region fallthrough
CT: control target
= control target key end

     0   :  { %v1376_v1 = vmov 1   ;;  %v1377_v2 = vmov 0   ;;  %s2114_s0 = inlined_call_operand.vmem [shape: bf16[2,4,256], index: 0, kind: input, shape index: {}]   ;;  %s2115_s1 = inlined_call_operand.vmem [shape: f32[16,4], index: 1, kind: input, shape index: {}]   ;;  %s2116_s2 = inlined_call_operand.vmem [shape: f32[16,12], index: 2, kind: input, shape index: {}]   ;;  %s2117_s3 = inlined_call_operand.vmem [shape: f32[18,16], index: 3, kind: input, shape index: {}]   ;;  %s2118_s4 = inlined_call_operand.vmem [shape: bf16[4,16], index: 4, kind: input, shape index: {}]   ;;  %s2119_s5 = inlined_call_operand.hbm [shape: bf16[2,4,256], index: 5, kind: output, shape index: {}]  }
   0x1   :  { %v24_v0 = vld [vmem:[%s2115_s1] sm:$0xff]  ;;  %1283 = vset.pattern.permute.xlu1 %v1376_v1  ;;  %1282 = vset.pattern.permute.xlu0 %v1377_v2  ;;  %v25_v3 = vld [vmem:[%s2115_s1 + $0x8] sm:$0xff] }
   0x2   :  { %87 = vperm.xlu1 %1283, %v24_v0   ;;  %32 = vperm.xlu0 %1282, %v24_v0  }
   0x3   :  { %1140 = vmatprep.mubr.bf16.mxu0 %v1377_v2  ;;  %1202 = vmatprep.mubr.bf16.mxu1 %v1377_v2 }
   0x4   :  { %10 = vsyncpa [#allocation3], 0  ;;  %v1378_v4 = vmov 2   ;;  %v1379_v5 = vmov 3   ;;  %v1441_v6 = vld [vmem:[%s2116_s2] sm:$0xff]  ;;  %v1449_v7 = vld [vmem:[%s2116_s2 + $0x8] sm:$0xff]  ;;  %v42_v13 = vlaneseq }
   0x5   :  { %v1380_v8 = vmov 4   ;;  %v1381_v9 = vmov 5   ;;  %v1382_v10 = vmov 6   ;;  %v1383_v11 = vmov 7   ;;  %v26_v15 = vld [vmem:[%s2114_s0] sm:$0x5] }
   0x6   :  { %91 = vperm.xlu1 %1283, %v25_v3   ;;  %37 = vperm.xlu0 %1282, %v25_v3   ;;  %v1384_v12 = vmov 8   ;;  %v43_v14 = vshrl.u32 %v42_v13, 7  ;;  %v27_v16 = vld [vmem:[%s2114_s0 + $0x4] sm:$0x5]  ;;  %v146_v17 = vld [vmem:[%s2114_s0] sm:$0xa]  ;;  %v28_v18 = vunpack.c.l.bf16 %v26_v15 }
   0x7   :  { %v29_v19 = vunpack.c.l.bf16 %v27_v16  ;;  %v147_v22 = vld [vmem:[%s2114_s0 + $0x4] sm:$0xa]  ;;  %v148_v27 = vunpack.c.l.bf16 %v146_v17  ;;  %s1386_s8 = smov 17   ;;  %s1387_s9 = smov 16  }
   0x8   :  { %v96_v20 = vsub.s32 1, %v43_v14  ;;  %v100_v21 = vsub.s32 5, %v43_v14  ;;  %v1480_v23 = vsub.s32 0, %v43_v14  ;;  %v48_v24 = vsub.s32 4, %v43_v14  ;;  %s1388_s10 = smov 15   ;;  %s1389_s11 = smov 1  }
   0x9   :  { %v162_v28 = vsub.s32 2, %v43_v14  ;;  %v149_v29 = vunpack.c.l.bf16 %v147_v22  ;;  %v166_v30 = vsub.s32 6, %v43_v14  ;;  %v222_v41 = vsub.s32 3, %v43_v14  ;;  %s1390_s12 = smov 127   ;;  %s1391_s13 = smov 113  }
   0xa   :  { %1284 = vset.pattern.permute.xlu1 %v1378_v4  ;;  %1286 = vset.pattern.permute.xlu0 %v1379_v5  ;;  %v97_v31 = vrot.slane %v28_v18, %v96_v20  ;;  %v101_v32 = vrot.slane %v28_v18, %v100_v21  ;;  %v105_v33 = vrot.slane %v29_v19, %v96_v20  ;;  %v226_v42 = vsub.s32 7, %v43_v14  ;;  %s1392_s14 = smov 112   ;;  %s1394_s15 = smov 111  }
   0xb   :  { %155 = vperm.xlu1 %1284, %v25_v3   ;;  %217 = vperm.xlu0 %1286, %v25_v3   ;;  %v109_v34 = vrot.slane %v29_v19, %v100_v21  ;;  %v45_v35 = vrot.slane %v28_v18, %v1480_v23  ;;  %v49_v36 = vrot.slane %v28_v18, %v48_v24 }
   0xc   :  { %v53_v37 = vrot.slane %v29_v19, %v1480_v23  ;;  %v57_v38 = vrot.slane %v29_v19, %v48_v24  ;;  %v163_v40 = vrot.slane %v148_v27, %v162_v28  ;;  %v167_v44 = vrot.slane %v148_v27, %v166_v30 }
   0xd   :  { %v171_v45 = vrot.slane %v149_v29, %v162_v28  ;;  %v117_v46 = vrot.slane %v97_v31, %v96_v20  ;;  %v121_v47 = vrot.slane %v101_v32, %v96_v20  ;;  %v125_v48 = vrot.slane %v105_v33, %v96_v20 }
   0xe   :  { %v175_v49 = vrot.slane %v149_v29, %v166_v30  ;;  %v129_v50 = vrot.slane %v109_v34, %v96_v20  ;;  %v65_v51 = vrot.slane %v45_v35, %v1480_v23  ;;  %v69_v52 = vrot.slane %v49_v36, %v1480_v23 }
   0xf   :  { %1285 = vset.pattern.permute.xlu1 %v1379_v5  ;;  %1288 = vset.pattern.permute.xlu0 %v1376_v1  ;;  %v73_v53 = vrot.slane %v53_v37, %v1480_v23  ;;  %v77_v54 = vrot.slane %v57_v38, %v1480_v23  ;;  %v183_v55 = vrot.slane %v163_v40, %v162_v28 }
  0x10   :  { %213 = vperm.xlu1 %1285, %v24_v0   ;;  %411 = vperm.xlu0 %1288, %v1441_v6   ;;  %v223_v56 = vrot.slane %v148_v27, %v222_v41  ;;  %v227_v57 = vrot.slane %v148_v27, %v226_v42  ;;  %v187_v59 = vrot.slane %v167_v44, %v162_v28 }
  0x11   :  { %v191_v60 = vrot.slane %v171_v45, %v162_v28  ;;  %v231_v61 = vrot.slane %v149_v29, %v222_v41  ;;  %v235_v62 = vrot.slane %v149_v29, %v226_v42  ;;  %v1385_v29 = vmov 9  }
  0x12   :  { %v243_v21 = vrot.slane %v223_v56, %v222_v41  ;;  %v247_v22 = vrot.slane %v227_v57, %v222_v41 }
  0x13   :  { %v251_v31 = vrot.slane %v231_v61, %v222_v41  ;;  %v255_v34 = vrot.slane %v235_v62, %v222_v41 }
  0x14   :  { %1287 = vset.pattern.permute.xlu1 %v1377_v2  ;;  %1289 = vset.pattern.permute.xlu0 %v1378_v4 }
  0x15   :  { %151 = vperm.xlu0 %1289, %v24_v0   ;;  %274 = vperm.xlu1 %1287, %v1441_v6  }
  0x19   :  { %279 = vperm.xlu1 %1287, %v1449_v7   ;;  %470 = vperm.xlu0 %1289, %v1449_v7  }
  0x1d   :  { %1290 = vset.pattern.permute.xlu1 %v1376_v1  ;;  %1293 = vset.pattern.permute.xlu0 %v1380_v8 }
  0x1e   :  { %415 = vperm.xlu1 %1290, %v1449_v7   ;;  %592 = vperm.xlu0 %1293, %v1441_v6  }
  0x22   :  { %1291 = vset.pattern.permute.xlu1 %v1378_v4  ;;  %1296 = vset.pattern.permute.xlu0 %v1381_v9  ;;  %v195_v4 = vrot.slane %v175_v49, %v162_v28 }
  0x23   :  { %466 = vperm.xlu1 %1291, %v1441_v6   ;;  %620 = vperm.xlu0 %1296, %v1449_v7  }
  0x27   :  { %1292 = vset.pattern.permute.xlu1 %v1379_v5  ;;  %1297 = vset.pattern.permute.xlu0 %v1382_v10 }
  0x28   :  { %529 = vperm.xlu1 %1292, %v1441_v6   ;;  %679 = vperm.xlu0 %1297, %v1441_v6  }
  0x2c   :  { %533 = vperm.xlu1 %1292, %v1449_v7   ;;  %1300 = vset.pattern.permute.xlu0 %v1383_v11 }
  0x2d   :  { %746 = vperm.xlu0 %1300, %v1449_v7  }
  0x30   :  { %1294 = vset.pattern.permute.xlu1 %v1380_v8 }
  0x31   :  { %596 = vperm.xlu1 %1294, %v1449_v7   ;;  %1301 = vset.pattern.permute.xlu0 %v1384_v12 }
  0x32   :  { %805 = vperm.xlu0 %1301, %v1441_v6  }
  0x35   :  { %1295 = vset.pattern.permute.xlu1 %v1381_v9 }
  0x36   :  { %616 = vperm.xlu1 %1295, %v1441_v6   ;;  %1304 = vset.pattern.permute.xlu0 %v1385_v29 }
  0x3a   :  { %1298 = vset.pattern.permute.xlu1 %v1382_v10 }
  0x3b   :  { %683 = vperm.xlu1 %1298, %v1449_v7  }
  0x3f   :  { %1299 = vset.pattern.permute.xlu1 %v1383_v11 }
  0x40   :  { %742 = vperm.xlu1 %1299, %v1441_v6  }
  0x44   :  { %1302 = vset.pattern.permute.xlu1 %v1384_v12 }
  0x45   :  { %809 = vperm.xlu1 %1302, %v1449_v7  }
  0x49   :  { %1303 = vset.pattern.permute.xlu1 %v1385_v29 }
  0x7d   :  { %v88_v25 = vpop.permute.xlu1 %87  ;;  %v33_v26 = vpop.permute.xlu0 %32 }
  0x7e   :  { %v130_v0 = vmul.f32 %v117_v46, %v88_v25  ;;  %v131_v1 = vmul.f32 %v121_v47, %v88_v25  ;;  %v134_v3 = vmul.f32 %v125_v48, %v88_v25  ;;  %v135_v5 = vmul.f32 %v129_v50, %v88_v25 }
  0x7f   :  { %v78_v8 = vmul.f32 %v65_v51, %v33_v26  ;;  %v79_v9 = vmul.f32 %v69_v52, %v33_v26  ;;  %v82_v10 = vmul.f32 %v73_v53, %v33_v26  ;;  %v83_v11 = vmul.f32 %v77_v54, %v33_v26 }
  0x81   :  { %v92_v39 = vpop.permute.xlu1 %91  ;;  %v38_v43 = vpop.permute.xlu0 %37  ;;  %v138_v26 = vadd.f32 %v130_v0, %v78_v8  ;;  %v139_v32 = vadd.f32 %v131_v1, %v79_v9  ;;  %v142_v33 = vadd.f32 %v134_v3, %v82_v10  ;;  %v143_v35 = vadd.f32 %v135_v5, %v83_v11 }
  0x82   :  { %v132_v12 = vmul.f32 %v117_v46, %v92_v39  ;;  %v133_v14 = vmul.f32 %v121_v47, %v92_v39  ;;  %v136_v15 = vmul.f32 %v125_v48, %v92_v39  ;;  %v80_v16 = vmul.f32 %v65_v51, %v38_v43 }
  0x83   :  { %v81_v17 = vmul.f32 %v69_v52, %v38_v43  ;;  %v84_v18 = vmul.f32 %v73_v53, %v38_v43  ;;  %v137_v19 = vmul.f32 %v129_v50, %v92_v39  ;;  %v85_v20 = vmul.f32 %v77_v54, %v38_v43 }
  0x84   :  { %v140_v36 = vadd.f32 %v132_v12, %v80_v16 }
  0x85   :  { %v141_v37 = vadd.f32 %v133_v14, %v81_v17  ;;  %v144_v38 = vadd.f32 %v136_v15, %v84_v18  ;;  %v145_v39 = vadd.f32 %v137_v19, %v85_v20 }
  0x86   :  { %v156_v58 = vpop.permute.xlu1 %155  ;;  %v218_v63 = vpop.permute.xlu0 %217 }
  0x87   :  { %v198_v25 = vmul.f32 %v183_v55, %v156_v58  ;;  %v199_v28 = vmul.f32 %v187_v59, %v156_v58  ;;  %v202_v30 = vmul.f32 %v191_v60, %v156_v58  ;;  %v203_v40 = vmul.f32 %v195_v4, %v156_v58 }
  0x88   :  { %v258_v42 = vmul.f32 %v243_v21, %v218_v63  ;;  %v259_v43 = vmul.f32 %v247_v22, %v218_v63  ;;  %v262_v47 = vmul.f32 %v251_v31, %v218_v63  ;;  %v263_v3 = vmul.f32 %v255_v34, %v218_v63 }
  0x89   :  { %v206_v44 = vadd.f32 %v198_v25, %v140_v36  ;;  %v207_v45 = vadd.f32 %v199_v28, %v141_v37  ;;  %v210_v46 = vadd.f32 %v202_v30, %v144_v38  ;;  %v211_v1 = vadd.f32 %v203_v40, %v145_v39 }
  0x8b   :  { %v214_v24 = vpop.permute.xlu1 %213  ;;  %v1488_v27 = vpop.permute.xlu0 %411  ;;  %v266_v5 = vadd.f32 %v258_v42, %v206_v44  ;;  %v267_v8 = vadd.f32 %v259_v43, %v207_v45  ;;  %v271_v17 = vadd.f32 %v263_v3, %v211_v1 }
  0x8c   :  { %v256_v54 = vmul.f32 %v243_v21, %v214_v24  ;;  %v257_v41 = vmul.f32 %v247_v22, %v214_v24  ;;  %v260_v56 = vmul.f32 %v251_v31, %v214_v24  ;;  %v261_v57 = vmul.f32 %v255_v34, %v214_v24 }
  0x90   :  { %v152_v48 = vpop.permute.xlu0 %151  ;;  %v275_v49 = vpop.permute.xlu1 %274 }
  0x91   :  { %v196_v50 = vmul.f32 %v183_v55, %v152_v48  ;;  %v197_v51 = vmul.f32 %v187_v59, %v152_v48  ;;  %v200_v52 = vmul.f32 %v191_v60, %v152_v48  ;;  %v201_v53 = vmul.f32 %v195_v4, %v152_v48 }
  0x92   :  { %v270_v59 = vadd.f32 %v262_v47, %v210_v46 }
  0x93   :  { %v204_v61 = vadd.f32 %v196_v50, %v138_v26  ;;  %v205_v62 = vadd.f32 %v197_v51, %v139_v32  ;;  %v208_v0 = vadd.f32 %v200_v52, %v142_v33  ;;  %v209_v58 = vadd.f32 %v201_v53, %v143_v35 }
  0x94   :  { %v280_v9 = vpop.permute.xlu1 %279 }
  0x95   :  { %v264_v10 = vadd.f32 %v256_v54, %v204_v61  ;;  %v265_v11 = vadd.f32 %v257_v41, %v205_v62  ;;  %v268_v12 = vadd.f32 %v260_v56, %v208_v0  ;;  %v269_v55 = vadd.f32 %v261_v57, %v209_v58 }
  0x96   :  { %v284_v60 = vadd.f32 %v280_v9, %v266_v5  ;;  %v285_v16 = vadd.f32 %v280_v9, %v267_v8  ;;  %v288_v18 = vadd.f32 %v280_v9, %v270_v59  ;;  %v289_v24 = vadd.f32 %v280_v9, %v271_v17 }
  0x97   :  { %v282_v4 = vadd.f32 %v275_v49, %v264_v10  ;;  %v283_v14 = vadd.f32 %v275_v49, %v265_v11  ;;  %v286_v15 = vadd.f32 %v275_v49, %v268_v12  ;;  %v287_v20 = vadd.f32 %v275_v49, %v269_v55  ;;  %v1560_v10 = vpop.permute.xlu0 %470 }
  0x98   :  { %v292_v19 = vmul.f32 0.5, %v284_v60  ;;  %v293_v29 = vmul.f32 0.5, %v285_v16  ;;  %v296_v25 = vmul.f32 0.5, %v288_v18  ;;  %v297_v30 = vmul.f32 0.5, %v289_v24 }
  0x99   :  { %v290_v21 = vmul.f32 0.5, %v282_v4  ;;  %v291_v22 = vmul.f32 0.5, %v283_v14  ;;  %v294_v63 = vmul.f32 0.5, %v286_v15  ;;  %v295_v28 = vmul.f32 0.5, %v287_v20  ;;  %v1538_v3 = vpop.permute.xlu1 %415 }
  0x9a   :  { %1310 = vtanh.f32 %v292_v19  ;;  %v1607_v19 = vand.u32 127, %v42_v13 }
  0x9b   :  { %1312 = vtanh.f32 %v290_v21  ;;  %v1570_v12 = vpop.permute.xlu0 %592 }
  0x9c   :  { %1314 = vtanh.f32 %v291_v22  ;;  %v1614_v22 = vadd.s32 128, %v1607_v19  ;;  %vm335_vm0 = vcmp.ge.s32.totalorder %v1607_v19, 16  ;;  %vm389_vm2 = vcmp.lt.s32.totalorder %v1607_v19, 17 }
  0x9d   :  { %1316 = vtanh.f32 %v294_v63  ;;  %v333_v63 = vand.u32 15, %v1607_v19  ;;  %vm444_vm5 = vcmp.lt.s32.totalorder %v1607_v19, 16  ;;  %vm507_vm7 = vcmp.lt.s32.totalorder %v1607_v19, 15 }
  0x9e   :  { %1318 = vtanh.f32 %v293_v29  ;;  %v1544_v5 = vpop.permute.xlu1 %466  ;;  %vm570_vm10 = vcmp.lt.s32.totalorder %v1607_v19, 1  ;;  %vm657_vm11 = vcmp.lt.s32.totalorder %v1607_v19, 127  ;;  %vm350_vm12 = vcmp.lt.s32.totalorder %v1614_v22, 240 }
  0x9f   :  { %1320 = vtanh.f32 %v296_v25  ;;  %v1576_v59 = vpop.permute.xlu0 %620  ;;  %vm1625_vm1 = vcmp.ge.s32.totalorder %v333_v63, 1  ;;  %vm1735_vm6 = vcmp.lt.s32.totalorder %v333_v63, 15  ;;  %vm720_vm13 = vcmp.lt.s32.totalorder %v1607_v19, 113 }
  0xa0   :  { %1322 = vtanh.f32 %v295_v28  ;;  %vm1643_vm4 = vmand %vm335_vm0, %vm1625_vm1  ;;  %vm783_vm15 = vcmp.lt.s32.totalorder %v1607_v19, 112 }
  0xa1   :  { %1324 = vtanh.f32 %v297_v30  ;;  %vm1750_vm9 = vmand %vm335_vm0, %vm1735_vm6 }
  0xa3   :  { %v1551_v8 = vpop.permute.xlu1 %529 }
  0xa7   :  { %v1311_v31 = vpop.eup %1310  ;;  %v1558_v9 = vpop.permute.xlu1 %533 }
  0xa8   :  { %v1313_v26 = vpop.eup %1312  ;;  %v308_v32 = vadd.f32 1.0, %v1311_v31 }
  0xa9   :  { %v1315_v33 = vpop.eup %1314  ;;  %v306_v34 = vadd.f32 1.0, %v1313_v26 }
  0xaa   :  { %v1317_v35 = vpop.eup %1316  ;;  %v316_v36 = vmul.f32 0.5, %v308_v32  ;;  %v307_v43 = vadd.f32 1.0, %v1315_v33 }
  0xab   :  { %v310_v37 = vadd.f32 1.0, %v1317_v35  ;;  %v314_v38 = vmul.f32 0.5, %v306_v34  ;;  %v1319_v39 = vpop.eup %1318 }
  0xac   :  { %v1490_v40 = vmul.f32 %v316_v36, %v284_v60  ;;  %v1321_v42 = vpop.eup %1320  ;;  %v309_v47 = vadd.f32 1.0, %v1319_v39  ;;  %v315_v52 = vmul.f32 0.5, %v307_v43  ;;  %v1566_v11 = vpop.permute.xlu1 %596  ;;  %v1393_v60 = vmov 10  }
  0xad   :  { %v318_v44 = vmul.f32 0.5, %v310_v37  ;;  %v1492_v45 = vmul.f32 %v314_v38, %v282_v4  ;;  %v1323_v46 = vpop.eup %1322  ;;  %v312_v48 = vadd.f32 1.0, %v1321_v42 }
  0xae   :  { %375 = vrot.lane.b32.xlu1 %v1490_v40, %s1386_s8  ;;  %v1325_v49 = vpop.eup %1324  ;;  %v311_v51 = vadd.f32 1.0, %v1323_v46  ;;  %v317_v41 = vmul.f32 0.5, %v309_v47  ;;  %v1502_v61 = vmul.f32 %v315_v52, %v283_v14  ;;  %v1585_v14 = vpop.permute.xlu0 %679 }
  0xaf   :  { %373 = vrot.lane.b32.xlu0 %v1492_v45, %s1386_s8  ;;  %v320_v50 = vmul.f32 0.5, %v312_v48  ;;  %v1496_v53 = vmul.f32 %v318_v44, %v286_v15  ;;  %v313_v54 = vadd.f32 1.0, %v1325_v49 }
  0xb0   :  { %v319_v57 = vmul.f32 0.5, %v311_v51  ;;  %v1504_v0 = vmul.f32 %v317_v41, %v285_v16 }
  0xb1   :  { %v1498_v56 = vmul.f32 %v320_v50, %v288_v18  ;;  %v321_v62 = vmul.f32 0.5, %v313_v54  ;;  %v1574_v55 = vpop.permute.xlu1 %616 }
  0xb2   :  { %v1508_v58 = vmul.f32 %v319_v57, %v287_v20  ;;  %v1593_v16 = vpop.permute.xlu0 %746 }
  0xb3   :  { %377 = vrot.lane.b32.xlu0 %v1496_v53, %s1386_s8  ;;  %379 = vrot.lane.b32.xlu1 %v1498_v56, %s1386_s8  ;;  %v1510_v1 = vmul.f32 %v321_v62, %v289_v24  ;;  %v334_v24 = vand.u32 15, %v1614_v22 }
  0xb5   :  { %vm1635_vm3 = vcmp.ge.s32.totalorder %v334_v24, 1  ;;  %vm1742_vm8 = vcmp.lt.s32.totalorder %v334_v24, 15 }
  0xb6   :  { %v1581_v4 = vpop.permute.xlu1 %683  ;;  %v1602_v18 = vpop.permute.xlu0 %805  ;;  %vm1888_vm14 = vmand %vm350_vm12, %vm1635_vm3 }
  0xb7   :  { %381 = vrot.lane.b32.xlu0 %v1502_v61, %s1386_s8  ;;  %383 = vrot.lane.b32.xlu1 %v1504_v0, %s1386_s8 }
  0xbb   :  { %385 = vrot.lane.b32.xlu0 %v1508_v58, %s1386_s8  ;;  %387 = vrot.lane.b32.xlu1 %v1510_v1, %s1386_s8  ;;  %v1591_v15 = vpop.permute.xlu1 %742 }
  0xbf   :  { %428 = vrot.lane.b32.xlu0 %v1492_v45, %s1387_s9  ;;  %430 = vrot.lane.b32.xlu1 %v1490_v40, %s1387_s9 }
  0xc0   :  { %v1598_v17 = vpop.permute.xlu1 %809 }
  0xc3   :  { %432 = vrot.lane.b32.xlu0 %v1496_v53, %s1387_s9  ;;  %434 = vrot.lane.b32.xlu1 %v1498_v56, %s1387_s9 }
  0xc7   :  { %436 = vrot.lane.b32.xlu0 %v1502_v61, %s1387_s9  ;;  %438 = vrot.lane.b32.xlu1 %v1504_v0, %s1387_s9 }
  0xcb   :  { %440 = vrot.lane.b32.xlu0 %v1508_v58, %s1387_s9  ;;  %442 = vrot.lane.b32.xlu1 %v1510_v1, %s1387_s9 }
  0xcf   :  { %493 = vrot.lane.b32.xlu0 %v1490_v40, %s1388_s10  ;;  %491 = vrot.lane.b32.xlu1 %v1492_v45, %s1388_s10 }
  0xd3   :  { %497 = vrot.lane.b32.xlu0 %v1498_v56, %s1388_s10  ;;  %495 = vrot.lane.b32.xlu1 %v1496_v53, %s1388_s10 }
  0xd7   :  { %501 = vrot.lane.b32.xlu0 %v1504_v0, %s1388_s10  ;;  %499 = vrot.lane.b32.xlu1 %v1502_v61, %s1388_s10 }
  0xdb   :  { %505 = vrot.lane.b32.xlu0 %v1510_v1, %s1388_s10  ;;  %503 = vrot.lane.b32.xlu1 %v1508_v58, %s1388_s10 }
  0xdf   :  { %558 = vrot.lane.b32.xlu0 %v1496_v53, %s1389_s11  ;;  %554 = vrot.lane.b32.xlu1 %v1492_v45, %s1389_s11 }
  0xe3   :  { %562 = vrot.lane.b32.xlu0 %v1502_v61, %s1389_s11  ;;  %556 = vrot.lane.b32.xlu1 %v1490_v40, %s1389_s11 }
  0xe7   :  { %566 = vrot.lane.b32.xlu0 %v1508_v58, %s1389_s11  ;;  %560 = vrot.lane.b32.xlu1 %v1498_v56, %s1389_s11 }
  0xeb   :  { %645 = vrot.lane.b32.xlu0 %v1496_v53, %s1390_s12  ;;  %564 = vrot.lane.b32.xlu1 %v1504_v0, %s1389_s11 }
  0xef   :  { %649 = vrot.lane.b32.xlu0 %v1502_v61, %s1390_s12  ;;  %568 = vrot.lane.b32.xlu1 %v1510_v1, %s1389_s11 }
  0xf3   :  { %653 = vrot.lane.b32.xlu0 %v1508_v58, %s1390_s12  ;;  %641 = vrot.lane.b32.xlu1 %v1492_v45, %s1390_s12 }
  0xf7   :  { %706 = vrot.lane.b32.xlu0 %v1490_v40, %s1391_s13  ;;  %643 = vrot.lane.b32.xlu1 %v1490_v40, %s1390_s12 }
  0xfb   :  { %710 = vrot.lane.b32.xlu0 %v1498_v56, %s1391_s13  ;;  %647 = vrot.lane.b32.xlu1 %v1498_v56, %s1390_s12 }
  0xff   :  { %714 = vrot.lane.b32.xlu0 %v1504_v0, %s1391_s13  ;;  %651 = vrot.lane.b32.xlu1 %v1504_v0, %s1390_s12 }
 0x103   :  { %718 = vrot.lane.b32.xlu0 %v1510_v1, %s1391_s13  ;;  %655 = vrot.lane.b32.xlu1 %v1510_v1, %s1390_s12 }
 0x107   :  { %872 = vperm.xlu0 %1304, %v1449_v7   ;;  %704 = vrot.lane.b32.xlu1 %v1492_v45, %s1391_s13 }
 0x10b   :  { %771 = vrot.lane.b32.xlu0 %v1496_v53, %s1392_s14  ;;  %708 = vrot.lane.b32.xlu1 %v1496_v53, %s1391_s13 }
 0x10c   :  { %1305 = vset.pattern.permute.xlu0 %v1393_v60 }
 0x10f   :  { %775 = vrot.lane.b32.xlu0 %v1502_v61, %s1392_s14  ;;  %712 = vrot.lane.b32.xlu1 %v1502_v61, %s1391_s13 }
 0x113   :  { %779 = vrot.lane.b32.xlu0 %v1508_v58, %s1392_s14  ;;  %716 = vrot.lane.b32.xlu1 %v1508_v58, %s1391_s13 }
 0x117   :  { %830 = vrot.lane.b32.xlu0 %v1492_v45, %s1394_s15  ;;  %868 = vperm.xlu1 %1303, %v1441_v6  }
 0x11b   :  { %834 = vrot.lane.b32.xlu0 %v1496_v53, %s1394_s15  ;;  %767 = vrot.lane.b32.xlu1 %v1492_v45, %s1392_s14 }
 0x11c   :  { %1306 = vset.pattern.permute.xlu1 %v1393_v60 }
 0x11f   :  { %838 = vrot.lane.b32.xlu0 %v1502_v61, %s1394_s15  ;;  %769 = vrot.lane.b32.xlu1 %v1490_v40, %s1392_s14 }
 0x120   :  { %v376_v20 = vpop.permute.xlu1 %375 }
 0x121   :  { %v374_v21 = vpop.permute.xlu0 %373 }
 0x123   :  { %842 = vrot.lane.b32.xlu0 %v1508_v58, %s1394_s15  ;;  %773 = vrot.lane.b32.xlu1 %v1498_v56, %s1392_s14 }
 0x125   :  { %v378_v13 = vpop.permute.xlu0 %377  ;;  %v380_v29 = vpop.permute.xlu1 %379 }
 0x127   :  { %892 = vperm.xlu0 %1305, %v1441_v6   ;;  %777 = vrot.lane.b32.xlu1 %v1504_v0, %s1392_s14 }
 0x129   :  { %v382_v6 = vpop.permute.xlu0 %381  ;;  %v384_v31 = vpop.permute.xlu1 %383 }
 0x12a   :  { %v390_v26 = vsel %vm389_vm2, %v374_v21, %v382_v6  ;;  %v394_v32 = vsel %vm389_vm2, %v382_v6, %v374_v21  ;;  %v391_v33 = vsel %vm389_vm2, %v376_v20, %v384_v31  ;;  %v395_v34 = vsel %vm389_vm2, %v384_v31, %v376_v20 }
 0x12b   :  { %v402_v35 = vsel %vm1643_vm4, %v394_v32, 0.0  ;;  %v403_v36 = vsel %vm1635_vm3, %v390_v26, 0.0  ;;  %1308 = vset.pattern.permute.xlu0 %v1377_v2  ;;  %v404_v37 = vsel %vm1643_vm4, %v395_v34, 0.0  ;;  %v405_v38 = vsel %vm1635_vm3, %v391_v33, 0.0  ;;  %781 = vrot.lane.b32.xlu1 %v1510_v1, %s1392_s14 }
 0x12c   :  { %v418_v62 = vmul.f32 %v1488_v27, %v402_v35  ;;  %v419_v60 = vmul.f32 %v1488_v27, %v403_v36  ;;  %v420_v21 = vmul.f32 %v1538_v3, %v404_v37 }
 0x12d   :  { %v386_v39 = vpop.permute.xlu0 %385  ;;  %v388_v42 = vpop.permute.xlu1 %387 }
 0x12e   :  { %v392_v43 = vsel %vm389_vm2, %v378_v13, %v386_v39  ;;  %v396_v44 = vsel %vm389_vm2, %v386_v39, %v378_v13  ;;  %v393_v46 = vsel %vm389_vm2, %v380_v29, %v388_v42  ;;  %v397_v47 = vsel %vm389_vm2, %v388_v42, %v380_v29 }
 0x12f   :  { %v406_v48 = vsel %vm1643_vm4, %v396_v44, 0.0  ;;  %v407_v49 = vsel %vm1635_vm3, %v392_v43, 0.0  ;;  %v408_v50 = vsel %vm1643_vm4, %v397_v47, 0.0  ;;  %v409_v51 = vsel %vm1635_vm3, %v393_v46, 0.0  ;;  %832 = vrot.lane.b32.xlu1 %v1490_v40, %s1394_s15 }
 0x130   :  { %v421_v13 = vmul.f32 %v1538_v3, %v405_v38  ;;  %v422_v34 = vmul.f32 %v1488_v27, %v406_v48  ;;  %v425_v38 = vmul.f32 %v1538_v3, %v409_v51  ;;  %v423_v39 = vmul.f32 %v1488_v27, %v407_v49 }
 0x131   :  { %v429_v52 = vpop.permute.xlu0 %428  ;;  %v431_v54 = vpop.permute.xlu1 %430  ;;  %vm972_vm2 = vcmask 7168  }
 0x133   :  { %836 = vrot.lane.b32.xlu1 %v1498_v56, %s1394_s15 }
 0x135   :  { %v433_v41 = vpop.permute.xlu0 %432  ;;  %v435_v57 = vpop.permute.xlu1 %434 }
 0x137   :  { %840 = vrot.lane.b32.xlu1 %v1504_v0, %s1394_s15 }
 0x139   :  { %v437_v20 = vpop.permute.xlu0 %436  ;;  %v439_v29 = vpop.permute.xlu1 %438 }
 0x13a   :  { %v445_v30 = vsel %vm444_vm5, %v429_v52, %v437_v20  ;;  %v449_v6 = vsel %vm444_vm5, %v437_v20, %v429_v52  ;;  %v446_v31 = vsel %vm444_vm5, %v431_v54, %v439_v29  ;;  %v450_v26 = vsel %vm444_vm5, %v439_v29, %v431_v54 }
 0x13b   :  { %v457_v32 = vsel %vm335_vm0, %v449_v6, 0.0  ;;  %v474_v33 = vmul.f32 %v1544_v5, %v445_v30  ;;  %v459_v35 = vsel %vm335_vm0, %v450_v26, 0.0  ;;  %v476_v36 = vmul.f32 %v1560_v10, %v446_v31  ;;  %844 = vrot.lane.b32.xlu1 %v1510_v1, %s1394_s15 }
 0x13c   :  { %v473_v37 = vmul.f32 %v1544_v5, %v457_v32  ;;  %v475_v42 = vmul.f32 %v1560_v10, %v459_v35 }
 0x13d   :  { %v482_v43 = vadd.f32 %v474_v33, %v419_v60  ;;  %v441_v44 = vpop.permute.xlu0 %440  ;;  %v484_v46 = vadd.f32 %v476_v36, %v421_v13  ;;  %v443_v48 = vpop.permute.xlu1 %442 }
 0x13e   :  { %v481_v47 = vadd.f32 %v473_v37, %v418_v62  ;;  %v447_v52 = vsel %vm444_vm5, %v433_v41, %v441_v44  ;;  %v451_v54 = vsel %vm444_vm5, %v441_v44, %v433_v41  ;;  %v483_v20 = vadd.f32 %v475_v42, %v420_v21 }
 0x13f   :  { %v448_v29 = vsel %vm444_vm5, %v435_v57, %v443_v48  ;;  %v452_v27 = vsel %vm444_vm5, %v443_v48, %v435_v57  ;;  %v461_v49 = vsel %vm335_vm0, %v451_v54, 0.0  ;;  %v478_v13 = vmul.f32 %v1544_v5, %v447_v52  ;;  %896 = vperm.xlu1 %1306, %v1449_v7  }
 0x140   :  { %v463_v51 = vsel %vm335_vm0, %v452_v27, 0.0  ;;  %v480_v62 = vmul.f32 %v1560_v10, %v448_v29  ;;  %v477_v60 = vmul.f32 %v1544_v5, %v461_v49  ;;  %v424_v41 = vmul.f32 %v1538_v3, %v408_v50 }
 0x141   :  { %v479_v21 = vmul.f32 %v1560_v10, %v463_v51  ;;  %v494_v30 = vpop.permute.xlu0 %493  ;;  %v486_v31 = vadd.f32 %v478_v13, %v423_v39  ;;  %v492_v26 = vpop.permute.xlu1 %491  ;;  %vm846_vm0 = vcmp.lt.s32.totalorder %v1607_v19, 111 }
 0x142   :  { %v488_v57 = vadd.f32 %v480_v62, %v425_v38  ;;  %v485_v6 = vadd.f32 %v477_v60, %v422_v34 }
 0x143   :  { %v487_v32 = vadd.f32 %v479_v21, %v424_v41  ;;  %1307 = vset.pattern.permute.xlu1 %v1377_v2 }
 0x145   :  { %v498_v33 = vpop.permute.xlu0 %497  ;;  %v496_v35 = vpop.permute.xlu1 %495 }
 0x149   :  { %v502_v3 = vpop.permute.xlu0 %501  ;;  %v500_v10 = vpop.permute.xlu1 %499 }
 0x14a   :  { %v509_v63 = vsel %vm507_vm7, %v494_v30, %v502_v3  ;;  %v513_v50 = vsel %vm507_vm7, %v502_v3, %v494_v30  ;;  %v508_v24 = vsel %vm507_vm7, %v492_v26, %v500_v10  ;;  %v512_v34 = vsel %vm507_vm7, %v500_v10, %v492_v26 }
 0x14b   :  { %v522_v36 = vsel %vm1750_vm9, %v513_v50, 0.0  ;;  %v523_v37 = vsel %vm1742_vm8, %v509_v63, 0.0  ;;  %v520_v38 = vsel %vm1750_vm9, %v512_v34, 0.0  ;;  %v521_v39 = vsel %vm1742_vm8, %v508_v24, 0.0 }
 0x14c   :  { %v538_v42 = vmul.f32 %v1558_v9, %v522_v36  ;;  %v539_v44 = vmul.f32 %v1558_v9, %v523_v37  ;;  %v536_v48 = vmul.f32 %v1551_v8, %v520_v38  ;;  %v537_v52 = vmul.f32 %v1551_v8, %v521_v39 }
 0x14d   :  { %v506_v54 = vpop.permute.xlu0 %505  ;;  %v504_v49 = vpop.permute.xlu1 %503 }
 0x14e   :  { %v1774_v29 = vadd.f32 %v538_v42, %v483_v20  ;;  %v1776_v27 = vadd.f32 %v539_v44, %v484_v46  ;;  %v511_v51 = vsel %vm507_vm7, %v498_v33, %v506_v54  ;;  %v515_v62 = vsel %vm507_vm7, %v506_v54, %v498_v33 }
 0x14f   :  { %v544_v60 = vadd.f32 %v536_v48, %v481_v47  ;;  %v545_v13 = vadd.f32 %v537_v52, %v482_v43  ;;  %v510_v41 = vsel %vm507_vm7, %v496_v35, %v504_v49  ;;  %v514_v21 = vsel %vm507_vm7, %v504_v49, %v496_v35 }
 0x150   :  { %v524_v20 = vsel %vm1750_vm9, %v514_v21, 0.0  ;;  %v525_v46 = vsel %vm1742_vm8, %v510_v41, 0.0  ;;  %v526_v30 = vsel %vm1750_vm9, %v515_v62, 0.0  ;;  %v527_v26 = vsel %vm1742_vm8, %v511_v51, 0.0 }
 0x151   :  { %v540_v43 = vmul.f32 %v1551_v8, %v524_v20  ;;  %v541_v47 = vmul.f32 %v1551_v8, %v525_v46  ;;  %v542_v33 = vmul.f32 %v1558_v9, %v526_v30  ;;  %v543_v35 = vmul.f32 %v1558_v9, %v527_v26  ;;  %v559_v3 = vpop.permute.xlu0 %558  ;;  %v555_v10 = vpop.permute.xlu1 %554 }
 0x152   :  { %v627_v41 = vmul.f32 %v1574_v55, %v1496_v53  ;;  %v628_v21 = vmul.f32 %v1574_v55, %v1508_v58 }
 0x153   :  { %v548_v63 = vadd.f32 %v540_v43, %v485_v6  ;;  %v549_v50 = vadd.f32 %v541_v47, %v486_v31  ;;  %v550_v24 = vadd.f32 %v542_v33, %v487_v32  ;;  %v551_v2 = vadd.f32 %v543_v35, %v488_v57 }
 0x154   :  { %v623_v57 = vmul.f32 %v1574_v55, %v1492_v45  ;;  %v624_v31 = vmul.f32 %v1574_v55, %v1502_v61 }
 0x155   :  { %v563_v34 = vpop.permute.xlu0 %562  ;;  %v557_v36 = vpop.permute.xlu1 %556 }
 0x156   :  { %v571_v37 = vsel %vm570_vm10, %v555_v10, %v563_v34  ;;  %v575_v8 = vsel %vm570_vm10, %v563_v34, %v555_v10  ;;  %v626_v10 = vmul.f32 %v1576_v59, %v1504_v0 }
 0x157   :  { %v583_v38 = vsel %vm1625_vm1, %v575_v8, 0.0  ;;  %v584_v9 = vsel %vm1635_vm3, %v571_v37, 0.0 }
 0x158   :  { %v599_v39 = vmul.f32 %v1570_v12, %v583_v38  ;;  %v600_v6 = vmul.f32 %v1570_v12, %v584_v9 }
 0x159   :  { %v567_v32 = vpop.permute.xlu0 %566  ;;  %v561_v48 = vpop.permute.xlu1 %560 }
 0x15a   :  { %v607_v42 = vadd.f32 %v599_v39, %v544_v60  ;;  %v608_v44 = vadd.f32 %v600_v6, %v545_v13  ;;  %v573_v52 = vsel %vm570_vm10, %v559_v3, %v567_v32  ;;  %v577_v54 = vsel %vm570_vm10, %v567_v32, %v559_v3 }
 0x15b   :  { %v587_v49 = vsel %vm1625_vm1, %v577_v54, 0.0  ;;  %v588_v51 = vsel %vm1635_vm3, %v573_v52, 0.0  ;;  %v625_v3 = vmul.f32 %v1576_v59, %v1490_v40  ;;  %v629_v39 = vmul.f32 %v1576_v59, %v1498_v56 }
 0x15c   :  { %v603_v45 = vmul.f32 %v1570_v12, %v587_v49  ;;  %v604_v61 = vmul.f32 %v1570_v12, %v588_v51  ;;  %v631_v62 = vadd.f32 %v623_v57, %v607_v42  ;;  %v632_v60 = vadd.f32 %v624_v31, %v608_v44 }
 0x15d   :  { %v646_v13 = vpop.permute.xlu0 %645  ;;  %v565_v30 = vpop.permute.xlu1 %564  ;;  %v630_v6 = vmul.f32 %v1576_v59, %v1510_v1 }
 0x15e   :  { %v611_v20 = vadd.f32 %v603_v45, %v548_v63  ;;  %v612_v46 = vadd.f32 %v604_v61, %v549_v50  ;;  %v572_v26 = vsel %vm570_vm10, %v557_v36, %v565_v30  ;;  %v576_v43 = vsel %vm570_vm10, %v565_v30, %v557_v36 }
 0x15f   :  { %v585_v12 = vsel %vm1625_vm1, %v576_v43, 0.0  ;;  %v586_v47 = vsel %vm1635_vm3, %v572_v26, 0.0 }
 0x160   :  { %v635_v33 = vadd.f32 %v627_v41, %v611_v20  ;;  %v636_v53 = vadd.f32 %v628_v21, %v612_v46  ;;  %v601_v35 = vmul.f32 %v1566_v11, %v585_v12  ;;  %v602_v58 = vmul.f32 %v1566_v11, %v586_v47 }
 0x161   :  { %v650_v55 = vpop.permute.xlu0 %649  ;;  %v569_v63 = vpop.permute.xlu1 %568 }
 0x162   :  { %v609_v50 = vadd.f32 %v601_v35, %v1774_v29  ;;  %v610_v34 = vadd.f32 %v602_v58, %v1776_v27  ;;  %v574_v36 = vsel %vm570_vm10, %v561_v48, %v569_v63  ;;  %v578_v37 = vsel %vm570_vm10, %v569_v63, %v561_v48 }
 0x163   :  { %v589_v8 = vsel %vm1625_vm1, %v578_v37, 0.0  ;;  %v590_v40 = vsel %vm1635_vm3, %v574_v36, 0.0  ;;  %vm1104_vm3 = vcmask 130048  }
 0x164   :  { %v605_v0 = vmul.f32 %v1566_v11, %v589_v8  ;;  %v606_v29 = vmul.f32 %v1566_v11, %v590_v40  ;;  %v633_v27 = vadd.f32 %v625_v3, %v609_v50  ;;  %v634_v9 = vadd.f32 %v626_v10, %v610_v34 }
 0x165   :  { %v654_v38 = vpop.permute.xlu0 %653  ;;  %v642_v57 = vpop.permute.xlu1 %641 }
 0x166   :  { %v660_v31 = vsel %vm657_vm11, %v646_v13, %v654_v38  ;;  %v664_v32 = vsel %vm657_vm11, %v654_v38, %v646_v13  ;;  %v613_v42 = vadd.f32 %v605_v0, %v550_v24  ;;  %v614_v44 = vadd.f32 %v606_v29, %v551_v2 }
 0x167   :  { %v658_v11 = vsel %vm657_vm11, %v642_v57, %v650_v55  ;;  %v662_v48 = vsel %vm657_vm11, %v650_v55, %v642_v57  ;;  %v674_v59 = vsel %vm1735_vm6, %v660_v31, 0.0  ;;  %v675_v52 = vsel %vm1742_vm8, %v664_v32, 0.0 }
 0x168   :  { %v670_v56 = vsel %vm1735_vm6, %v658_v11, 0.0  ;;  %v671_v1 = vsel %vm1742_vm8, %v662_v48, 0.0  ;;  %v690_v54 = vmul.f32 %v1585_v14, %v674_v59  ;;  %v691_v49 = vmul.f32 %v1585_v14, %v675_v52 }
 0x169   :  { %v686_v24 = vmul.f32 %v1585_v14, %v670_v56  ;;  %v687_v2 = vmul.f32 %v1585_v14, %v671_v1  ;;  %v707_v51 = vpop.permute.xlu0 %706  ;;  %v644_v45 = vpop.permute.xlu1 %643  ;;  %v637_v61 = vadd.f32 %v629_v39, %v613_v42  ;;  %v638_v13 = vadd.f32 %v630_v6, %v614_v44 }
 0x16a   :  { %v1878_v20 = vadd.f32 %v690_v54, %v635_v33  ;;  %v1880_v46 = vadd.f32 %v691_v49, %v636_v53 }
 0x16b   :  { %v694_v41 = vadd.f32 %v686_v24, %v631_v62  ;;  %v695_v21 = vadd.f32 %v687_v2, %v632_v60 }
 0x16d   :  { %v711_v30 = vpop.permute.xlu0 %710  ;;  %v648_v26 = vpop.permute.xlu1 %647 }
 0x171   :  { %v715_v62 = vpop.permute.xlu0 %714  ;;  %v652_v60 = vpop.permute.xlu1 %651 }
 0x172   :  { %v722_v43 = vsel %vm720_vm13, %v707_v51, %v715_v62  ;;  %v726_v12 = vsel %vm720_vm13, %v715_v62, %v707_v51  ;;  %v659_v47 = vsel %vm657_vm11, %v644_v45, %v652_v60  ;;  %v663_v28 = vsel %vm657_vm11, %v652_v60, %v644_v45 }
 0x173   :  { %v735_v33 = vsel %vm1625_vm1, %v722_v43, 0.0  ;;  %v736_v53 = vsel %vm1888_vm14, %v726_v12, 0.0  ;;  %v672_v35 = vsel %vm1735_vm6, %v659_v47, 0.0  ;;  %v673_v58 = vsel %vm1742_vm8, %v663_v28, 0.0 }
 0x174   :  { %v688_v55 = vmul.f32 %v1581_v4, %v672_v35  ;;  %v689_v3 = vmul.f32 %v1581_v4, %v673_v58  ;;  %v751_v10 = vmul.f32 %v1593_v16, %v735_v33  ;;  %v752_v63 = vmul.f32 %v1593_v16, %v736_v53 }
 0x175   :  { %v719_v50 = vpop.permute.xlu0 %718  ;;  %v656_v34 = vpop.permute.xlu1 %655 }
 0x176   :  { %v724_v36 = vsel %vm720_vm13, %v711_v30, %v719_v50  ;;  %v728_v37 = vsel %vm720_vm13, %v719_v50, %v711_v30  ;;  %v696_v8 = vadd.f32 %v688_v55, %v633_v27  ;;  %v697_v40 = vadd.f32 %v689_v3, %v634_v9 }
 0x177   :  { %v661_v0 = vsel %vm657_vm11, %v648_v26, %v656_v34  ;;  %v665_v29 = vsel %vm657_vm11, %v656_v34, %v648_v26  ;;  %v739_v6 = vsel %vm1625_vm1, %v724_v36, 0.0  ;;  %v740_v57 = vsel %vm1888_vm14, %v728_v37, 0.0 }
 0x178   :  { %v676_v38 = vsel %vm1735_vm6, %v661_v0, 0.0  ;;  %v677_v39 = vsel %vm1742_vm8, %v665_v29, 0.0  ;;  %v1928_v27 = vadd.f32 %v751_v10, %v696_v8  ;;  %v1930_v9 = vadd.f32 %v752_v63, %v697_v40 }
 0x179   :  { %v692_v31 = vmul.f32 %v1581_v4, %v676_v38  ;;  %v693_v32 = vmul.f32 %v1581_v4, %v677_v39  ;;  %v755_v42 = vmul.f32 %v1593_v16, %v739_v6  ;;  %v756_v44 = vmul.f32 %v1593_v16, %v740_v57  ;;  %v705_v11 = vpop.permute.xlu1 %704 }
 0x17b   :  { %v700_v48 = vadd.f32 %v692_v31, %v637_v61  ;;  %v701_v56 = vadd.f32 %v693_v32, %v638_v13 }
 0x17d   :  { %v1936_v1 = vadd.f32 %v755_v42, %v700_v48  ;;  %v1938_v59 = vadd.f32 %v756_v44, %v701_v56  ;;  %v709_v52 = vpop.permute.xlu1 %708 }
 0x181   :  { %v713_v24 = vpop.permute.xlu1 %712 }
 0x182   :  { %v1940_v2 = vpop.permute.xlu0 %872  ;;  %v721_v54 = vsel %vm720_vm13, %v705_v11, %v713_v24  ;;  %v725_v4 = vsel %vm720_vm13, %v713_v24, %v705_v11 }
 0x183   :  { %v733_v16 = vsel %vm1625_vm1, %v721_v54, 0.0  ;;  %v734_v49 = vsel %vm1888_vm14, %v725_v4, 0.0 }
 0x184   :  { %v749_v51 = vmul.f32 %v1591_v15, %v733_v16  ;;  %v750_v45 = vmul.f32 %v1591_v15, %v734_v49 }
 0x185   :  { %v717_v61 = vpop.permute.xlu1 %716 }
 0x186   :  { %v772_v13 = vpop.permute.xlu0 %771  ;;  %v757_v30 = vadd.f32 %v749_v51, %v694_v41  ;;  %v758_v26 = vadd.f32 %v750_v45, %v695_v21  ;;  %v723_v62 = vsel %vm720_vm13, %v709_v52, %v717_v61  ;;  %v727_v60 = vsel %vm720_vm13, %v717_v61, %v709_v52 }
 0x187   :  { %v737_v43 = vsel %vm1625_vm1, %v723_v62, 0.0  ;;  %v738_v12 = vsel %vm1888_vm14, %v727_v60, 0.0  ;;  %vm1985_vm1 = vmand %vm350_vm12, %vm1742_vm8 }
 0x188   :  { %v753_v47 = vmul.f32 %v1591_v15, %v737_v43  ;;  %v754_v28 = vmul.f32 %v1591_v15, %v738_v12 }
 0x18a   :  { %v776_v33 = vpop.permute.xlu0 %775  ;;  %v761_v41 = vadd.f32 %v753_v47, %v1878_v20  ;;  %v762_v21 = vadd.f32 %v754_v28, %v1880_v46 }
 0x18e   :  { %v780_v53 = vpop.permute.xlu0 %779 }
 0x18f   :  { %v786_v35 = vsel %vm783_vm15, %v772_v13, %v780_v53  ;;  %v790_v25 = vsel %vm783_vm15, %v780_v53, %v772_v13 }
 0x190   :  { %v801_v14 = vsel %vm350_vm12, %v790_v25, 0.0  ;;  %v816_v58 = vmul.f32 %v1602_v18, %v786_v35 }
 0x191   :  { %v817_v15 = vmul.f32 %v1602_v18, %v801_v14 }
 0x192   :  { %v824_v55 = vadd.f32 %v816_v58, %v761_v41  ;;  %v831_v20 = vpop.permute.xlu0 %830  ;;  %v869_v46 = vpop.permute.xlu1 %868 }
 0x193   :  { %v825_v3 = vadd.f32 %v817_v15, %v762_v21 }
 0x196   :  { %v835_v10 = vpop.permute.xlu0 %834  ;;  %v768_v63 = vpop.permute.xlu1 %767 }
 0x197   :  { %v784_v50 = vsel %vm783_vm15, %v768_v63, %v776_v33  ;;  %v788_v34 = vsel %vm783_vm15, %v776_v33, %v768_v63 }
 0x198   :  { %v797_v36 = vsel %vm350_vm12, %v788_v34, 0.0  ;;  %v812_v37 = vmul.f32 %v1602_v18, %v784_v50 }
 0x199   :  { %v813_v40 = vmul.f32 %v1602_v18, %v797_v36 }
 0x19a   :  { %v839_v0 = vpop.permute.xlu0 %838  ;;  %v820_v29 = vadd.f32 %v812_v37, %v757_v30  ;;  %v770_v38 = vpop.permute.xlu1 %769 }
 0x19b   :  { %v847_v39 = vsel %vm846_vm0, %v831_v20, %v839_v0  ;;  %v851_v6 = vsel %vm846_vm0, %v839_v0, %v831_v20  ;;  %v821_v57 = vadd.f32 %v813_v40, %v758_v26 }
 0x19c   :  { %v859_v7 = vsel %vm1735_vm6, %v847_v39, 0.0  ;;  %v860_v31 = vsel %vm1985_vm1, %v851_v6, 0.0 }
 0x19d   :  { %v875_v32 = vmul.f32 %v869_v46, %v859_v7  ;;  %v876_v42 = vmul.f32 %v869_v46, %v860_v31 }
 0x19e   :  { %v843_v44 = vpop.permute.xlu0 %842  ;;  %v774_v48 = vpop.permute.xlu1 %773 }
 0x19f   :  { %v883_v18 = vadd.f32 %v875_v32, %v820_v29  ;;  %v884_v11 = vadd.f32 %v876_v42, %v821_v57  ;;  %v849_v56 = vsel %vm846_vm0, %v835_v10, %v843_v44  ;;  %v853_v52 = vsel %vm846_vm0, %v843_v44, %v835_v10 }
 0x1a0   :  { %v863_v24 = vsel %vm1735_vm6, %v849_v56, 0.0  ;;  %v864_v54 = vsel %vm1985_vm1, %v853_v52, 0.0 }
 0x1a1   :  { %v879_v4 = vmul.f32 %v869_v46, %v863_v24  ;;  %v880_v16 = vmul.f32 %v869_v46, %v864_v54 }
 0x1a2   :  { %v893_v49 = vpop.permute.xlu0 %892  ;;  %v778_v61 = vpop.permute.xlu1 %777 }
 0x1a3   :  { %v887_v51 = vadd.f32 %v879_v4, %v824_v55  ;;  %v888_v45 = vadd.f32 %v880_v16, %v825_v3  ;;  %v899_v13 = vadd.f32 %v893_v49, %v883_v18  ;;  %v900_v30 = vadd.f32 %v893_v49, %v884_v11 }
 0x1a4   :  { %v785_v26 = vsel %vm783_vm15, %v770_v38, %v778_v61  ;;  %v789_v62 = vsel %vm783_vm15, %v778_v61, %v770_v38 }
 0x1a5   :  { %v799_v60 = vsel %vm350_vm12, %v789_v62, 0.0  ;;  %v814_v43 = vmul.f32 %v1598_v17, %v785_v26  ;;  %v907_v12 = vmul.f32 0.5, %v899_v13  ;;  %v908_v47 = vmul.f32 0.5, %v900_v30 }
 0x1a6   :  { %v815_v28 = vmul.f32 %v1598_v17, %v799_v60  ;;  %v782_v41 = vpop.permute.xlu1 %781  ;;  %v2026_v3 = vadd.f32 %v893_v49, %v887_v51  ;;  %v2028_v46 = vadd.f32 %v893_v49, %v888_v45 }
 0x1a7   :  { %v822_v33 = vadd.f32 %v814_v43, %v1928_v27  ;;  %1326 = vtanh.f32 %v907_v12  ;;  %v787_v53 = vsel %vm783_vm15, %v774_v48, %v782_v41  ;;  %v791_v35 = vsel %vm783_vm15, %v782_v41, %v774_v48 }
 0x1a8   :  { %v823_v21 = vadd.f32 %v815_v28, %v1930_v9  ;;  %1328 = vtanh.f32 %v908_v47  ;;  %v803_v25 = vsel %vm350_vm12, %v791_v35, 0.0  ;;  %v818_v14 = vmul.f32 %v1598_v17, %v787_v53 }
 0x1a9   :  { %v819_v58 = vmul.f32 %v1598_v17, %v803_v25  ;;  %v911_v29 = vmul.f32 0.5, %v2026_v3  ;;  %v912_v38 = vmul.f32 0.5, %v2028_v46 }
 0x1aa   :  { %v826_v27 = vadd.f32 %v818_v14, %v1936_v1  ;;  %v833_v15 = vpop.permute.xlu1 %832 }
 0x1ab   :  { %v827_v55 = vadd.f32 %v819_v58, %v1938_v59  ;;  %1330 = vtanh.f32 %v911_v29 }
 0x1ac   :  { %1332 = vtanh.f32 %v912_v38 }
 0x1ae   :  { %v837_v9 = vpop.permute.xlu1 %836 }
 0x1b2   :  { %v841_v20 = vpop.permute.xlu1 %840 }
 0x1b3   :  { %v848_v22 = vsel %vm846_vm0, %v833_v15, %v841_v20  ;;  %v852_v63 = vsel %vm846_vm0, %v841_v20, %v833_v15 }
 0x1b4   :  { %v1327_v10 = vpop.eup %1326  ;;  %v861_v17 = vsel %vm1735_vm6, %v848_v22, 0.0  ;;  %v862_v1 = vsel %vm1985_vm1, %v852_v63, 0.0 }
 0x1b5   :  { %v1329_v50 = vpop.eup %1328  ;;  %v923_v59 = vadd.f32 1.0, %v1327_v10  ;;  %v877_v34 = vmul.f32 %v1940_v2, %v861_v17  ;;  %v878_v36 = vmul.f32 %v1940_v2, %v862_v1 }
 0x1b6   :  { %v924_v37 = vadd.f32 1.0, %v1329_v50  ;;  %v845_v40 = vpop.permute.xlu1 %844  ;;  %v948_v50 = vld [vmem:[%s2117_s3 + $0x8] sm:$0xff] }
 0x1b7   :  { %v931_v0 = vmul.f32 0.5, %v923_v59  ;;  %v885_v39 = vadd.f32 %v877_v34, %v822_v33  ;;  %v886_v6 = vadd.f32 %v878_v36, %v823_v21  ;;  %v850_v57 = vsel %vm846_vm0, %v837_v9, %v845_v40 }
 0x1b8   :  { %v854_v7 = vsel %vm846_vm0, %v845_v40, %v837_v9  ;;  %v865_v31 = vsel %vm1735_vm6, %v850_v57, 0.0  ;;  %v932_v42 = vmul.f32 0.5, %v924_v37 }
 0x1b9   :  { %v866_v32 = vsel %vm1985_vm1, %v854_v7, 0.0  ;;  %v2050_v44 = vmul.f32 %v931_v0, %v899_v13  ;;  %v881_v18 = vmul.f32 %v1940_v2, %v865_v31 }
 0x1ba   :  { %v882_v11 = vmul.f32 %v1940_v2, %v866_v32  ;;  %v897_v48 = vpop.permute.xlu1 %896  ;;  %v2054_v56 = vmul.f32 %v932_v42, %v900_v30  ;;  %v1331_v2 = vpop.eup %1330 }
 0x1bb   :  { %v889_v52 = vadd.f32 %v881_v18, %v826_v27  ;;  %v901_v24 = vadd.f32 %v897_v48, %v885_v39  ;;  %v902_v54 = vadd.f32 %v897_v48, %v886_v6  ;;  %v1333_v61 = vpop.eup %1332  ;;  %v927_v30 = vadd.f32 1.0, %v1331_v2 }
 0x1bc   :  { %v890_v19 = vadd.f32 %v882_v11, %v827_v55  ;;  %v951_v5 = vadd.f32 %v2054_v56, %v2050_v44  ;;  %v928_v26 = vadd.f32 1.0, %v1333_v61 }
 0x1bd   :  { %v905_v8 = vadd.f32 %v897_v48, %v889_v52  ;;  %v909_v16 = vmul.f32 0.5, %v901_v24  ;;  %v910_v49 = vmul.f32 0.5, %v902_v54  ;;  %v935_v53 = vmul.f32 0.5, %v927_v30 }
 0x1be   :  { %v906_v4 = vadd.f32 %v897_v48, %v890_v19  ;;  %952 = vadd.xlane.f32.xlu1 %v951_v5  ;;  %v936_v35 = vmul.f32 0.5, %v928_v26 }
 0x1bf   :  { %v913_v51 = vmul.f32 0.5, %v905_v8  ;;  %1334 = vtanh.f32 %v909_v16  ;;  %v2069_v20 = vmul.f32 %v935_v53, %v2026_v3  ;;  %v1251_v3 = vld [vmem:[%s2117_s3 + $0x11] ss:$0 sm:$0xff] }
 0x1c0   :  { %v914_v45 = vmul.f32 0.5, %v906_v4  ;;  %1336 = vtanh.f32 %v910_v49  ;;  %v2072_v10 = vmul.f32 %v936_v35, %v2028_v46  ;;  %v947_v46 = vld [vmem:[%s2117_s3] sm:$0xff] }
 0x1c1   :  { %1338 = vtanh.f32 %v913_v51 }
 0x1c2   :  { %1340 = vtanh.f32 %v914_v45  ;;  %v957_v63 = vadd.f32 %v2072_v10, %v2069_v20 }
 0x1cc   :  { %v1335_v13 = vpop.eup %1334 }
 0x1cd   :  { %v1337_v62 = vpop.eup %1336  ;;  %v925_v60 = vadd.f32 1.0, %v1335_v13 }
 0x1ce   :  { %v1339_v43 = vpop.eup %1338  ;;  %v926_v12 = vadd.f32 1.0, %v1337_v62 }
 0x1cf   :  { %v1341_v47 = vpop.eup %1340  ;;  %v933_v28 = vmul.f32 0.5, %v925_v60  ;;  %v929_v33 = vadd.f32 1.0, %v1339_v43 }
 0x1d0   :  { %v934_v41 = vmul.f32 0.5, %v926_v12  ;;  %v930_v21 = vadd.f32 1.0, %v1341_v47 }
 0x1d1   :  { %v2058_v25 = vmul.f32 %v933_v28, %v901_v24  ;;  %v937_v14 = vmul.f32 0.5, %v929_v33 }
 0x1d2   :  { %v2060_v58 = vmul.f32 %v934_v41, %v902_v54  ;;  %v938_v27 = vmul.f32 0.5, %v930_v21 }
 0x1d3   :  { %v2062_v15 = vmul.f32 %v937_v14, %v905_v8 }
 0x1d4   :  { %v954_v55 = vadd.f32 %v2060_v58, %v2058_v25  ;;  %v2066_v9 = vmul.f32 %v938_v27, %v906_v4  ;;  %v1250_v4 = vld [vmem:[%s2117_s3 + $0x10] ss:$0 sm:$0xff] }
 0x1d6   :  { %955 = vadd.xlane.f32.xlu0 %v954_v55  ;;  %v960_v22 = vadd.f32 %v2066_v9, %v2062_v15 }
 0x1d8   :  { %961 = vadd.xlane.f32.xlu1 %v960_v22 }
 0x1da   :  { %958 = vadd.xlane.f32.xlu0 %v957_v63 }
 0x1e9   :  { %1019 = vrot.lane.b32.xlu1 %v948_v50, %s1390_s12 }
 0x1ed   :  { %1037 = vbcast.lane.b32.xlu1 %v1251_v3, 256 }
 0x1f0   :  { %1017 = vrot.lane.b32.xlu0 %v947_v46, %s1390_s12 }
 0x1f4   :  { %1041 = vbcast.lane.b32.xlu0 %v1251_v3, 264 }
 0x247   :  { %v953_v17 = vpop.xlane.xlu1 %952 }
 0x248   :  { %v964_v1 = vmul.f32 0.00390625, %v953_v17 }
 0x24a   :  { %v968_v34 = vmul.f32 %v964_v1, %v947_v46 }
 0x24c   :  { %v973_v38 = vsel %vm972_vm2, %v968_v34, 0.0 }
 0x25f   :  { %v956_v59 = vpop.xlane.xlu0 %955 }
 0x260   :  { %v965_v36 = vmul.f32 0.00390625, %v956_v59 }
 0x261   :  { %v962_v37 = vpop.xlane.xlu1 %961 }
 0x262   :  { %v969_v40 = vmul.f32 %v965_v36, %v948_v50  ;;  %v967_v0 = vmul.f32 0.00390625, %v962_v37 }
 0x263   :  { %v959_v29 = vpop.xlane.xlu0 %958 }
 0x264   :  { %v974_v39 = vsel %vm972_vm2, %v969_v40, 0.0  ;;  %v971_v6 = vmul.f32 %v967_v0, %v948_v50  ;;  %v966_v57 = vmul.f32 0.00390625, %v959_v29 }
 0x265   :  { %v975_v7 = vadd.f32 %v974_v39, %v973_v38  ;;  %v1020_v43 = vpop.permute.xlu1 %1019 }
 0x266   :  { %v970_v31 = vmul.f32 %v966_v57, %v947_v46  ;;  %v983_v42 = vsel %vm972_vm2, %v971_v6, 0.0 }
 0x267   :  { %v976_v32 = vrot.slane %v975_v7, 4  ;;  %v1018_v60 = vpop.permute.xlu0 %1017 }
 0x268   :  { %v982_v18 = vsel %vm972_vm2, %v970_v31, 0.0 }
 0x269   :  { %v977_v11 = vadd.f32 %v976_v32, %v975_v7  ;;  %v984_v48 = vadd.f32 %v983_v42, %v982_v18  ;;  %v1038_v35 = vpop.permute.xlu1 %1037  ;;  %v1094_v18 = vld [vmem:[%s2116_s2] sm:$0xf] }
 0x26b   :  { %v978_v52 = vrot.slane %v977_v11, 2  ;;  %v985_v19 = vrot.slane %v984_v48, 4  ;;  %v1042_v53 = vpop.permute.xlu0 %1041 }
 0x26d   :  { %v979_v24 = vadd.f32 %v978_v52, %v977_v11  ;;  %v986_v54 = vadd.f32 %v985_v19, %v984_v48  ;;  %v1395_v11 = vmov 11  }
 0x26f   :  { %v980_v5 = vrot.slane %v979_v24, 1  ;;  %v987_v8 = vrot.slane %v986_v54, 2 }
 0x271   :  { %v988_v16 = vadd.f32 %v987_v8, %v986_v54  ;;  %v981_v49 = vadd.f32 %v980_v5, %v979_v24 }
 0x273   :  { %v989_v51 = vrot.slane %v988_v16, 1  ;;  %v995_v45 = vadd.f32 %v1250_v4, %v981_v49  ;;  %v1093_v49 = vld [vmem:[%s2118_s4] sm:$0x3] }
 0x275   :  { %v990_v2 = vadd.f32 %v989_v51, %v988_v16  ;;  %v997_v61 = vmul.f32 0.5, %v995_v45 }
 0x277   :  { %v996_v13 = vadd.f32 %v1250_v4, %v990_v2  ;;  %1342 = vtanh.f32 %v997_v61  ;;  %v1149_v61 = vld [vmem:[%s2114_s0] sm:$0xff]   ;;  %s1396_s0 = smov [#allocation2]  }
 0x278   :  { %s1239_s4 = sshll.u32 %s1396_s0, 4  ;;  %s1240_s4 = int_to_ptr.vmem [resolvable:$true] %s1239_s4 }
 0x279   :  { %v998_v30 = vmul.f32 0.5, %v996_v13  ;;  %s1354_s27 = scalar_lea.vmem %s1240_s4, 128  ;;  %p1359_p1 = scmp.lt.s32.totalorder %s1240_s4, %s1240_s4 }
 0x27a   :  { %p1355_p0 = scmp.ne.s32.totalorder %s1240_s4, %s1354_s27  ;;  %p1360_p2 = scmp.lt.s32.totalorder %s1354_s27, %s1354_s27 }
 0x27b   :  { %1344 = vtanh.f32 %v998_v30 }
 0x27c   :  { %p1361_p3 = por %p1360_p2, %p1359_p1 }
 0x27e   :  { %p1362_p4 = pnand %p1361_p3, %p1355_p0 }
 0x284   :  { %v1343_v26 = vpop.eup %1342 }
 0x285   :  { %v1001_v62 = vadd.f32 1.0, %v1343_v26 }
 0x287   :  { %v1003_v12 = vmul.f32 0.5, %v1001_v62 }
 0x288   :  { %v1345_v47 = vpop.eup %1344 }
 0x289   :  { %v1002_v28 = vadd.f32 1.0, %v1345_v47  ;;  %v1005_v33 = vmul.f32 %v1003_v12, %v995_v45  ;;  %v1213_v12 = vunpack.c.h.bf16 %v1149_v61 }
 0x28b   :  { %v1004_v41 = vmul.f32 0.5, %v1002_v28  ;;  %v1010_v21 = vrot.slane %v1005_v33, %v1480_v23 }
 0x28d   :  { %v1006_v14 = vmul.f32 %v1004_v41, %v996_v13  ;;  %v1023_v27 = vmul.f32 %v1018_v60, %v1010_v21  ;;  %v1024_v55 = vmul.f32 %v1020_v43, %v1010_v21  ;;  %v1150_v13 = vunpack.c.l.bf16 %v1149_v61 }
 0x28e   :  { %v1215_v21 = vcombine.high %v1213_v12, %v1213_v12 }
 0x28f   :  { %v1014_v22 = vrot.slane %v1006_v14, %v1480_v23  ;;  %v1046_v63 = vadd.f32 %v1042_v53, %v1024_v55  ;;  %v1045_v50 = vadd.f32 %v1038_v35, %v1023_v27 }
 0x291   :  { %v1025_v3 = vmul.f32 %v1018_v60, %v1014_v22  ;;  %v1026_v46 = vmul.f32 %v1020_v43, %v1014_v22  ;;  %v1050_v17 = vmul.f32 0.5, %v1046_v63  ;;  %v1049_v1 = vmul.f32 0.5, %v1045_v50 }
 0x293   :  { %v1048_v59 = vadd.f32 %v1042_v53, %v1026_v46  ;;  %1346 = vtanh.f32 %v1050_v17  ;;  %v1047_v34 = vadd.f32 %v1038_v35, %v1025_v3 }
 0x294   :  { %1348 = vtanh.f32 %v1049_v1 }
 0x295   :  { %v1052_v36 = vmul.f32 0.5, %v1048_v59  ;;  %v1051_v37 = vmul.f32 0.5, %v1047_v34 }
 0x297   :  { %1350 = vtanh.f32 %v1052_v36 }
 0x298   :  { %1352 = vtanh.f32 %v1051_v37 }
 0x2a0   :  { %v1347_v40 = vpop.eup %1346 }
 0x2a1   :  { %v1349_v0 = vpop.eup %1348  ;;  %v1058_v29 = vadd.f32 1.0, %v1347_v40 }
 0x2a2   :  { %v1057_v38 = vadd.f32 1.0, %v1349_v0 }
 0x2a3   :  { %v1062_v39 = vmul.f32 0.5, %v1058_v29 }
 0x2a4   :  { %v1351_v23 = vpop.eup %1350  ;;  %v1061_v6 = vmul.f32 0.5, %v1057_v38 }
 0x2a5   :  { %v1353_v57 = vpop.eup %1352  ;;  %1072 = vperm.xlu0 %1308, %v1062_v39   ;;  %v1060_v31 = vadd.f32 1.0, %v1351_v23 }
 0x2a6   :  { %v1059_v7 = vadd.f32 1.0, %v1353_v57  ;;  %1067 = vperm.xlu1 %1307, %v1061_v6  }
 0x2a7   :  { %v1064_v42 = vmul.f32 0.5, %v1060_v31 }
 0x2a8   :  { %v1063_v32 = vmul.f32 0.5, %v1059_v7 }
 0x2a9   :  { %1309 = vset.pattern.permute.xlu0 %v1395_v11 }
 0x2aa   :  { %1077 = vperm.xlu1 %1307, %v1063_v32   ;;  %1101 = vperm.xlu0 %1309, %v1094_v18  }
 0x2ae   :  { %1082 = vperm.xlu1 %1307, %v1064_v42  }
 0x320   :  { %v1073_v48 = vpop.permute.xlu0 %1072 }
 0x321   :  { %v1087_v52 = vmul.f32 %v1073_v48, %v2058_v25  ;;  %v1088_v19 = vmul.f32 %v1073_v48, %v2060_v58  ;;  %v1068_v24 = vpop.permute.xlu1 %1067 }
 0x322   :  { %v1085_v54 = vmul.f32 %v1068_v24, %v2050_v44  ;;  %v1086_v5 = vmul.f32 %v1068_v24, %v2054_v56 }
 0x324   :  { %v1096_v8 = vpack.c.bf16 %v1088_v19, %v1086_v5  ;;  %v1095_v4 = vpack.c.bf16 %v1087_v52, %v1085_v54 }
 0x325   :  { %v1078_v16 = vpop.permute.xlu1 %1077  ;;  %v1102_v30 = vpop.permute.xlu0 %1101 }
 0x326   :  { %1122 = vmatprep.subr.bf16.mxu0 %v1096_v8  ;;  %v1089_v25 = vmul.f32 %v1078_v16, %v2069_v20  ;;  %v1090_v58 = vmul.f32 %v1078_v16, %v2072_v10  ;;  %v1152_v20 = vcombine.high %v1150_v13, %v1150_v13 }
 0x327   :  { %1123 = vmatpush1.bf16.msra.mxu0 %v1095_v4 }
 0x329   :  { %v1083_v51 = vpop.permute.xlu1 %1082 }
 0x32a   :  { %v1091_v45 = vmul.f32 %v1083_v51, %v2062_v15  ;;  %v1092_v44 = vmul.f32 %v1083_v51, %v2066_v9  ;;  %1252 = vmatmul.mubr.msk.bf16.vlgmr.msra.gmra.mxu0 %vm1104_vm3, %v1093_v49 }
 0x32c   :  { %v1098_v56 = vpack.c.bf16 %v1092_v44, %v1090_v58  ;;  %v1097_v2 = vpack.c.bf16 %v1091_v45, %v1089_v25 }
 0x32e   :  { %1184 = vmatprep.subr.bf16.mxu1 %v1098_v56 }
 0x32f   :  { %1185 = vmatpush1.bf16.msra.mxu1 %v1097_v2 }
 0x332   :  { %1255 = vmatmul.mubr.msk.bf16.vlgmr.msra.gmra.mxu1 %vm1104_vm3, %v1093_v49 }
 0x3ea   :  { %v1142_v26 = vpop.f32.mrf.mxu0 }
 0x3eb   :  { %v1143_v62 = vadd.f32 %v1142_v26, %v1102_v30 }
 0x3ec   :  { %v1144_v10 = vpop.f32.mrf.mxu0 }
 0x3ed   :  { %v1145_v60 = vadd.f32 %v1144_v10, %v1102_v30  ;;  %v1154_v15 = vadd.f32 %v1150_v13, %v1143_v62 }
 0x3ee   :  { %v1146_v43 = vpop.f32.mrf.mxu0 }
 0x3ef   :  { %v1155_v9 = vadd.f32 %v1152_v20, %v1145_v60 }
 0x3f0   :  { %v1147_v47 = vpop.f32.mrf.mxu0 }
 0x3f1   :  { %v1253_v28 = vpack.c.bf16 %v1155_v9, %v1154_v15 }
 0x3f2   :  { %v1204_v33 = vpop.f32.mrf.mxu1 }
 0x3f3   :  { %1254 = vst.sshfl [vmem:[#allocation2] sm:$0x33 pattern:$0x76325410] %v1253_v28  ;;  %v1205_v41 = vadd.f32 %v1204_v33, %v1102_v30 }
 0x3f4   :  { %v1206_v53 = vpop.f32.mrf.mxu1 }
 0x3f5   :  { %v1207_v35 = vadd.f32 %v1206_v53, %v1102_v30  ;;  %v1217_v27 = vadd.f32 %v1213_v12, %v1205_v41 }
 0x3f6   :  { %v1208_v14 = vpop.f32.mrf.mxu1 }
 0x3f7   :  { %v1218_v55 = vadd.f32 %v1215_v21, %v1207_v35 }
 0x3f8   :  { %v1209_v22 = vpop.f32.mrf.mxu1 }
 0x3f9   :  { %v1257_v63 = vpack.c.bf16 %v1218_v55, %v1217_v27 }
 0x3fb   :  { %1258 = vst.sshfl [vmem:[#allocation2 + $0x4] sm:$0x33 pattern:$0x76325410] %v1257_v63 }
 0x3fc   :  { %1365 = shalt.err (!%p1362_p4)
}
 0x3fd   :  { %s1397_s28 = smov 64   ;;  %s1398_s29 = smov 4  }
 0x3fe   :  { %1245 = dma.vmem_to_hbm [thread:$0]  %s1240_s4, 128, %s2119_s5, [#allocation3], %s1397_s28, %s1397_s28, %s1398_s29  }
 0x3ff   :  { %1374 = dma.done.wait [#allocation3], 128  }
 0x400   :  { %1375 = vsyncadd [#allocation3], 4294967168 }
 0x401   :  { %1249 = vsyncpa [#allocation3], 1 }

</bundles_post_ra>
